<compile_context>
chip_gen: v5e
topology: v5e:2x2
jax: 0.10.0
libtpu: 0.0.40
codegen_flags: <defaults>
</compile_context>

<pallas_src>
import numpy as np
import jax
import jax.numpy as jnp
from jax import lax
from jax.experimental import pallas as pl
from jax.experimental.pallas import tpu as pltpu

# ----------------------------- configuration --------------------------------
B = 2                      # batch
C_IN, H, W = 1, 32, 32     # img_shape (NCHW)
NUM_CLASSES = 3
SPHERE_FDIM = 32           # F
OUTPUT_SIZE = 7            # 1 + 6
K_PAD = 8                  # output_size padded to 8 sublanes
NUM_VERTICES = 12          # V  (level-0 icosahedron)
NUM_GROUPS = 12            # G  (rotation-group elements, proxied by vertex perms)
PATCH = 4                  # encoder = conv(kernel=4, stride=4) + relu
FMAP_SIZE = H // PATCH     # 8
NUM_PIX = FMAP_SIZE * FMAP_SIZE           # P = 64, B*P = 128 (lane dense)
KDIM = C_IN * PATCH * PATCH               # 16
COUT_PAD = SPHERE_FDIM * K_PAD            # 256 channels (f-major, k-minor)
JDIM = SPHERE_FDIM * NUM_VERTICES         # 384 = flat (f, v) ico contraction
SIGMA = 0.2
COVERAGE = 0.9
OUT_LANES = 128                           # lane-dense output slab width


# ----------------------------- fused Pallas kernel ---------------------------

def _so3_fused_kernel(o_ref, patchesT_ref, enc_wT_ref, enc_bT_ref, w_blk_ref,
                      lib_ref, bias_ref, out_ref, relay_s):
    # ---- EqEncoder hot path: conv(4x4, s4) as a transposed matmul + relu ----
    # (256, 16) @ (16, 128) -> (256, 128): 128-lane-dense output.
    fmapT = jnp.dot(enc_wT_ref[...], patchesT_ref[...],
                    preferred_element_type=jnp.float32)
    fmapT = jnp.maximum(fmapT + enc_bT_ref[...], 0.0)

    # ---- FmapSampler: gaussian sphere sampling, both batches in ONE matmul
    # via block-diagonal weights: (256, 128) @ (128, 24) -> (256, 24).
    # Kept as a traced value (no HBM / masked-scratch round trip).
    meshT = jnp.dot(fmapT, w_blk_ref[...], preferred_element_type=jnp.float32)

    # ---- Relayout for the ico conv: channel rows c = f*8 + k are split into
    # (f, k) and f is moved next to v so the contraction over (f, v) becomes
    # ONE flat 384-long axis per batch: relay_s[b, k, f*12 + v] = meshT[f*8+k,
    # b*12+v].  64 small static lane-slice stores; every lane of the
    # lane-dense (2, 8, 384) scratch is written, so no init is needed.
    for f in range(SPHERE_FDIM):
        slab = meshT[f * K_PAD:(f + 1) * K_PAD, :]          # (8, 24), one vreg
        relay_s[0, :, f * NUM_VERTICES:(f + 1) * NUM_VERTICES] = \
            slab[:, :NUM_VERTICES]
        relay_s[1, :, f * NUM_VERTICES:(f + 1) * NUM_VERTICES] = \
            slab[:, NUM_VERTICES:]

    # ---- output slab: zero the full-width lane-dense slab once, then fill.
    out_ref[...] = jnp.zeros((B * NUM_GROUPS, OUT_LANES), jnp.float32)

    # ---- DynamicIcoConv: in-kernel class lookup + ONE flat K=384 MXU
    # contraction per batch element (replaces the old 32 serialized K=24
    # dot_generals).  relu(mesh) is applied on the relaid-out value (6 vregs).
    for b in range(B):
        cls = o_ref[b]                                       # SMEM scalar
        sphere_b = lib_ref[cls]                              # (G=12, 384)
        mesh_b = jnp.maximum(relay_s[b], 0.0)                # (K=8, 384)
        out_b = lax.dot_general(sphere_b, mesh_b,
                                (((1,), (1,)), ((), ())),
                                preferred_element_type=jnp.float32)  # (12, 8)
        out_b = out_b + bias_ref[cls]                        # (1, 8) broadcast
        out_ref[b * NUM_GROUPS:(b + 1) * NUM_GROUPS, :K_PAD] = out_b


def so3_fused(o, patchesT, enc_wT, enc_bT, w_blk, sphere_lib_flat, bias_lib):
    return pl.pallas_call(
        _so3_fused_kernel,
        out_shape=jax.ShapeDtypeStruct((B * NUM_GROUPS, OUT_LANES), jnp.float32),
        in_specs=[
            pl.BlockSpec(memory_space=pltpu.MemorySpace.SMEM),   # class ids
            pl.BlockSpec(patchesT.shape, lambda: (0, 0)),
            pl.BlockSpec(enc_wT.shape, lambda: (0, 0)),
            pl.BlockSpec(enc_bT.shape, lambda: (0, 0)),
            pl.BlockSpec(w_blk.shape, lambda: (0, 0)),
            pl.BlockSpec(sphere_lib_flat.shape, lambda: (0, 0, 0)),
            pl.BlockSpec(bias_lib.shape, lambda: (0, 0, 0)),
        ],
        out_specs=pl.BlockSpec((B * NUM_GROUPS, OUT_LANES), lambda: (0, 0)),
        scratch_shapes=[pltpu.VMEM((B, K_PAD, JDIM), jnp.float32)],
    )(o, patchesT, enc_wT, enc_bT, w_blk, sphere_lib_flat, bias_lib)


# ----------------------------- glue (plain JAX / numpy) ----------------------

def icosahedron_vertices():
    phi = (1.0 + 5.0 ** 0.5) / 2.0
    v = np.array([[-1, phi, 0], [1, phi, 0], [-1, -phi, 0], [1, -phi, 0],
                  [0, -1, phi], [0, 1, phi], [0, -1, -phi], [0, 1, -phi],
                  [phi, 0, -1], [phi, 0, 1], [-phi, 0, -1], [-phi, 0, 1]],
                 dtype=np.float32)
    return v / np.linalg.norm(v, axis=1, keepdims=True)


def build_sampler_weights(fmap_size, sigma, coverage):
    # TODO(synk): exact FmapSampler projection/weighting unknown; use
    # orthographic vertex projection + normalized gaussian pixel weights.
    verts = icosahedron_vertices()                        # (V, 3)
    coords = (np.arange(fmap_size, dtype=np.float32) + 0.5) / fmap_size * 2.0 - 1.0
    gy, gx = np.meshgrid(coords, coords, indexing="ij")
    px = gx.reshape(-1)
    py = gy.reshape(-1)
    cx = coverage * verts[:, 0:1]
    cy = coverage * verts[:, 1:2]
    d2 = (px[None, :] - cx) ** 2 + (py[None, :] - cy) ** 2
    w = np.exp(-d2 / (2.0 * sigma ** 2))
    w = w / (w.sum(axis=1, keepdims=True) + 1e-8)
    return w.astype(np.float32)                           # (V, P)


def im2col_T(x):
    # NCHW -> (C*kh*kw, B*P): channel-major rows, (batch, h', w') columns,
    # i.e. the transposed im2col so the encoder matmul output is lane-dense.
    b, c, h, w = x.shape
    x = x.reshape(b, c, h // PATCH, PATCH, w // PATCH, PATCH)
    x = jnp.transpose(x, (1, 3, 5, 0, 2, 4))              # (C, kh, kw, B, h', w')
    return x.reshape(c * PATCH * PATCH, b * (h // PATCH) * (w // PATCH))


def gs_orthogonalization(rot6):
    # 6D -> 3x3 rotation (Gram-Schmidt), rows = (b1, b2, b3)
    a1 = rot6[..., 0:3]
    a2 = rot6[..., 3:6]
    b1 = a1 / (jnp.linalg.norm(a1, axis=-1, keepdims=True) + 1e-8)
    a2p = a2 - jnp.sum(b1 * a2, axis=-1, keepdims=True) * b1
    b2 = a2p / (jnp.linalg.norm(a2p, axis=-1, keepdims=True) + 1e-8)
    b3 = jnp.cross(b1, b2)
    return jnp.stack([b1, b2, b3], axis=-2)


def init_params(key):
    k1, k2, k3, k4 = jax.random.split(key, 4)

    # EqEncoder conv weights generated in the reference (KDIM, F, K) layout,
    # then repacked: pad k 7 -> 8 with zero columns and transpose so channels
    # (f-major, k-minor) sit on sublanes.
    enc_w = jax.random.normal(k1, (KDIM, SPHERE_FDIM, OUTPUT_SIZE), jnp.float32) * 0.1
    enc_b = jax.random.normal(k2, (SPHERE_FDIM, OUTPUT_SIZE), jnp.float32) * 0.01
    pad_w = jnp.zeros((KDIM, SPHERE_FDIM, K_PAD - OUTPUT_SIZE), jnp.float32)
    pad_b = jnp.zeros((SPHERE_FDIM, K_PAD - OUTPUT_SIZE), jnp.float32)
    enc_wT = jnp.concatenate([enc_w, pad_w], axis=-1).reshape(KDIM, COUT_PAD).T  # (256, 16)
    enc_bT = jnp.concatenate([enc_b, pad_b], axis=-1).reshape(COUT_PAD, 1)       # (256, 1)

    # FeatureSphereLibrary: per-class sphere features + per-class bias.
    sphere_lib = jax.random.normal(k3, (NUM_CLASSES, NUM_VERTICES, SPHERE_FDIM),
                                   jnp.float32) * 0.1
    bias_lib = jax.random.normal(k4, (NUM_CLASSES, OUTPUT_SIZE), jnp.float32) * 0.01
    bias_pad_lib = jnp.concatenate(
        [bias_lib, jnp.zeros((NUM_CLASSES, K_PAD - OUTPUT_SIZE), jnp.float32)],
        axis=-1).reshape(NUM_CLASSES, 1, K_PAD)                       # (NC, 1, 8)

    # TODO(synk): true DynamicIcoConv group-vertex permutation table unknown;
    # use a deterministic cyclic vertex permutation per group element.
    perm = (np.arange(NUM_VERTICES)[None, :]
            + np.arange(NUM_GROUPS)[:, None]) % NUM_VERTICES             # (G, V)
    # Fold the static permutation in and flatten the (f, v) contraction axis
    # (f-major, v-minor) to match the in-kernel relayout: (NC, G, F*V).
    sp = np.asarray(sphere_lib)[:, perm, :]                               # (NC, G, V, F)
    sp = np.transpose(sp, (0, 1, 3, 2)).reshape(NUM_CLASSES, NUM_GROUPS, JDIM)

    # FmapSampler gaussian weights, stored block-diagonally over the batch so a
    # single (256, B*P) @ (B*P, B*V) matmul samples both batches at once.
    w_samp = build_sampler_weights(FMAP_SIZE, SIGMA, COVERAGE)            # (V, P)
    blk = np.zeros((B * NUM_PIX, B * NUM_VERTICES), np.float32)
    for b in range(B):
        blk[b * NUM_PIX:(b + 1) * NUM_PIX,
            b * NUM_VERTICES:(b + 1) * NUM_VERTICES] = w_samp.T

    return dict(enc_wT=enc_wT, enc_bT=enc_bT,
                sphere_lib_flat=jnp.asarray(sp), bias_lib=bias_pad_lib,
                w_samp_block=jnp.asarray(blk))


def so3_predictor_forward(params, x, o):
    # x: (B, C, H, W) NCHW float32, o: (B,) int32 class ids
    patchesT = im2col_T(x)                                    # (KDIM, B*P)

    # ---- single fused Pallas kernel: encoder -> sampler -> ico conv;
    # class lookup happens inside the kernel (o goes to SMEM).
    out128 = so3_fused(o.astype(jnp.int32), patchesT,
                       params["enc_wT"], params["enc_bT"],
                       params["w_samp_block"], params["sphere_lib_flat"],
                       params["bias_lib"])                     # (B*G, 128)
    out = out128[:, :OUTPUT_SIZE].reshape(B, NUM_GROUPS, OUTPUT_SIZE)

    # ---- split + Gram-Schmidt (plain JAX epilogue) ----
    act = out[..., 0:1]                                        # (B, G, 1)
    rot = out[..., 1:OUTPUT_SIZE]                              # (B, G, 6)
    rotmat_offset = gs_orthogonalization(rot)                  # (B, G, 3, 3)
    return act, rotmat_offset


if __name__ == "__main__":
    key = jax.random.PRNGKey(0)
    kp, kx, ko = jax.random.split(key, 3)
    params = init_params(kp)
    x = jax.random.normal(kx, (B, C_IN, H, W), jnp.float32)
    o = jax.random.randint(ko, (B,), 0, NUM_CLASSES, jnp.int32)

    act, rotmat_offset = jax.jit(so3_predictor_forward)(params, x, o)
    jax.block_until_ready((act, rotmat_offset))

    assert act.shape == (B, NUM_GROUPS, 1)
    assert rotmat_offset.shape == (B, NUM_GROUPS, 3, 3)
    assert bool(jnp.all(jnp.isfinite(act))) and bool(jnp.all(jnp.isfinite(rotmat_offset)))
    print("KERNEL_OK")
</pallas_src>

<mosaic_0001>
module attributes {stable_mosaic.version = 11 : i64} {
  func.func @_so3_fused_kernel(%arg0: memref<2xi32, #tpu.memory_space<smem>>, %arg1: memref<16x128xf32, #tpu.memory_space<vmem>>, %arg2: memref<256x16xf32, #tpu.memory_space<vmem>>, %arg3: memref<256x1xf32, #tpu.memory_space<vmem>>, %arg4: memref<128x24xf32, #tpu.memory_space<vmem>>, %arg5: memref<3x12x384xf32, #tpu.memory_space<vmem>>, %arg6: memref<3x1x8xf32, #tpu.memory_space<vmem>>, %arg7: memref<24x128xf32, #tpu.memory_space<vmem>>, %arg8: memref<2x8x384xf32, #tpu.memory_space<vmem>>) attributes {dimension_semantics = [], scalar_prefetch = 0 : i64, scratch_operands = 1 : i64, tpu.core_type = #tpu.core_type<tc>} {
    %c0 = arith.constant 0 : index
    %c0_0 = arith.constant 0 : index
    %0 = vector.load %arg2[%c0, %c0_0] : memref<256x16xf32, #tpu.memory_space<vmem>>, vector<256x16xf32>
    %c0_1 = arith.constant 0 : index
    %c0_2 = arith.constant 0 : index
    %1 = vector.load %arg1[%c0_1, %c0_2] : memref<16x128xf32, #tpu.memory_space<vmem>>, vector<16x128xf32>
    %cst = arith.constant dense<0.000000e+00> : vector<256x128xf32>
    %2 = tpu.matmul %0, %1, %cst {dimension_numbers = #tpu.dot_dimension_numbers<[1], [0], [0], [1], [0, 0, 1, 1], [], []>} : vector<256x16xf32>, vector<16x128xf32>, vector<256x128xf32> -> vector<256x128xf32>
    %c0_3 = arith.constant 0 : index
    %c0_4 = arith.constant 0 : index
    %3 = vector.load %arg3[%c0_3, %c0_4] : memref<256x1xf32, #tpu.memory_space<vmem>>, vector<256x1xf32>
    %4 = vector.broadcast %3 : vector<256x1xf32> to vector<256x128xf32>
    %5 = arith.addf %2, %4 : vector<256x128xf32>
    %cst_5 = arith.constant 0.000000e+00 : f32
    %6 = vector.broadcast %cst_5 : f32 to vector<256x128xf32>
    %7 = arith.maximumf %5, %6 : vector<256x128xf32>
    %c0_6 = arith.constant 0 : index
    %c0_7 = arith.constant 0 : index
    %8 = vector.load %arg4[%c0_6, %c0_7] : memref<128x24xf32, #tpu.memory_space<vmem>>, vector<128x24xf32>
    %cst_8 = arith.constant dense<0.000000e+00> : vector<256x24xf32>
    %9 = tpu.matmul %7, %8, %cst_8 {dimension_numbers = #tpu.dot_dimension_numbers<[1], [0], [0], [1], [0, 0, 1, 1], [], []>} : vector<256x128xf32>, vector<128x24xf32>, vector<256x24xf32> -> vector<256x24xf32>
    %10 = vector.extract_strided_slice %9 {offsets = [0, 0], sizes = [8, 24], strides = [1, 1]} : vector<256x24xf32> to vector<8x24xf32>
    %11 = vector.extract_strided_slice %10 {offsets = [0, 0], sizes = [8, 12], strides = [1, 1]} : vector<8x24xf32> to vector<8x12xf32>
    %c0_9 = arith.constant 0 : index
    %c0_10 = arith.constant 0 : index
    %c0_11 = arith.constant 0 : index
    %12 = vector.load %arg8[%c0_9, %c0_10, %c0_11] : memref<2x8x384xf32, #tpu.memory_space<vmem>>, vector<1x8x12xf32>
    %13 = vector.shape_cast %12 : vector<1x8x12xf32> to vector<8x12xf32>
    %14 = vector.shape_cast %11 : vector<8x12xf32> to vector<1x8x12xf32>
    tpu.vector_store %arg8[%c0_9, %c0_10, %c0_11], %14 {strides = array<i32>} : memref<2x8x384xf32, #tpu.memory_space<vmem>>, vector<1x8x12xf32>,
    %15 = vector.extract_strided_slice %10 {offsets = [0, 12], sizes = [8, 12], strides = [1, 1]} : vector<8x24xf32> to vector<8x12xf32>
    %c1 = arith.constant 1 : index
    %c0_12 = arith.constant 0 : index
    %c0_13 = arith.constant 0 : index
    %16 = vector.load %arg8[%c1, %c0_12, %c0_13] : memref<2x8x384xf32, #tpu.memory_space<vmem>>, vector<1x8x12xf32>
    %17 = vector.shape_cast %16 : vector<1x8x12xf32> to vector<8x12xf32>
    %18 = vector.shape_cast %15 : vector<8x12xf32> to vector<1x8x12xf32>
    tpu.vector_store %arg8[%c1, %c0_12, %c0_13], %18 {strides = array<i32>} : memref<2x8x384xf32, #tpu.memory_space<vmem>>, vector<1x8x12xf32>,
    %19 = vector.extract_strided_slice %9 {offsets = [8, 0], sizes = [8, 24], strides = [1, 1]} : vector<256x24xf32> to vector<8x24xf32>
    %20 = vector.extract_strided_slice %19 {offsets = [0, 0], sizes = [8, 12], strides = [1, 1]} : vector<8x24xf32> to vector<8x12xf32>
    %c0_14 = arith.constant 0 : index
    %c0_15 = arith.constant 0 : index
    %c12 = arith.constant 12 : index
    %21 = vector.load %arg8[%c0_14, %c0_15, %c12] : memref<2x8x384xf32, #tpu.memory_space<vmem>>, vector<1x8x12xf32>
    %22 = vector.shape_cast %21 : vector<1x8x12xf32> to vector<8x12xf32>
    %23 = vector.shape_cast %20 : vector<8x12xf32> to vector<1x8x12xf32>
    tpu.vector_store %arg8[%c0_14, %c0_15, %c12], %23 {strides = array<i32>} : memref<2x8x384xf32, #tpu.memory_space<vmem>>, vector<1x8x12xf32>,
    %24 = vector.extract_strided_slice %19 {offsets = [0, 12], sizes = [8, 12], strides = [1, 1]} : vector<8x24xf32> to vector<8x12xf32>
    %c1_16 = arith.constant 1 : index
    %c0_17 = arith.constant 0 : index
    %c12_18 = arith.constant 12 : index
    %25 = vector.load %arg8[%c1_16, %c0_17, %c12_18] : memref<2x8x384xf32, #tpu.memory_space<vmem>>, vector<1x8x12xf32>
    %26 = vector.shape_cast %25 : vector<1x8x12xf32> to vector<8x12xf32>
    %27 = vector.shape_cast %24 : vector<8x12xf32> to vector<1x8x12xf32>
    tpu.vector_store %arg8[%c1_16, %c0_17, %c12_18], %27 {strides = array<i32>} : memref<2x8x384xf32, #tpu.memory_space<vmem>>, vector<1x8x12xf32>,
    %28 = vector.extract_strided_slice %9 {offsets = [16, 0], sizes = [8, 24], strides = [1, 1]} : vector<256x24xf32> to vector<8x24xf32>
    %29 = vector.extract_strided_slice %28 {offsets = [0, 0], sizes = [8, 12], strides = [1, 1]} : vector<8x24xf32> to vector<8x12xf32>
    %c0_19 = arith.constant 0 : index
    %c0_20 = arith.constant 0 : index
    %c24 = arith.constant 24 : index
    %30 = vector.load %arg8[%c0_19, %c0_20, %c24] : memref<2x8x384xf32, #tpu.memory_space<vmem>>, vector<1x8x12xf32>
    %31 = vector.shape_cast %30 : vector<1x8x12xf32> to vector<8x12xf32>
    %32 = vector.shape_cast %29 : vector<8x12xf32> to vector<1x8x12xf32>
    tpu.vector_store %arg8[%c0_19, %c0_20, %c24], %32 {strides = array<i32>} : memref<2x8x384xf32, #tpu.memory_space<vmem>>, vector<1x8x12xf32>,
    %33 = vector.extract_strided_slice %28 {offsets = [0, 12], sizes = [8, 12], strides = [1, 1]} : vector<8x24xf32> to vector<8x12xf32>
    %c1_21 = arith.constant 1 : index
    %c0_22 = arith.constant 0 : index
    %c24_23 = arith.constant 24 : index
    %34 = vector.load %arg8[%c1_21, %c0_22, %c24_23] : memref<2x8x384xf32, #tpu.memory_space<vmem>>, vector<1x8x12xf32>
    %35 = vector.shape_cast %34 : vector<1x8x12xf32> to vector<8x12xf32>
    %36 = vector.shape_cast %33 : vector<8x12xf32> to vector<1x8x12xf32>
    tpu.vector_store %arg8[%c1_21, %c0_22, %c24_23], %36 {strides = array<i32>} : memref<2x8x384xf32, #tpu.memory_space<vmem>>, vector<1x8x12xf32>,
    %37 = vector.extract_strided_slice %9 {offsets = [24, 0], sizes = [8, 24], strides = [1, 1]} : vector<256x24xf32> to vector<8x24xf32>
    %38 = vector.extract_strided_slice %37 {offsets = [0, 0], sizes = [8, 12], strides = [1, 1]} : vector<8x24xf32> to vector<8x12xf32>
    %c0_24 = arith.constant 0 : index
    %c0_25 = arith.constant 0 : index
    %c36 = arith.constant 36 : index
    %39 = vector.load %arg8[%c0_24, %c0_25, %c36] : memref<2x8x384xf32, #tpu.memory_space<vmem>>, vector<1x8x12xf32>
    %40 = vector.shape_cast %39 : vector<1x8x12xf32> to vector<8x12xf32>
    %41 = vector.shape_cast %38 : vector<8x12xf32> to vector<1x8x12xf32>
    tpu.vector_store %arg8[%c0_24, %c0_25, %c36], %41 {strides = array<i32>} : memref<2x8x384xf32, #tpu.memory_space<vmem>>, vector<1x8x12xf32>,
    %42 = vector.extract_strided_slice %37 {offsets = [0, 12], sizes = [8, 12], strides = [1, 1]} : vector<8x24xf32> to vector<8x12xf32>
    %c1_26 = arith.constant 1 : index
    %c0_27 = arith.constant 0 : index
    %c36_28 = arith.constant 36 : index
    %43 = vector.load %arg8[%c1_26, %c0_27, %c36_28] : memref<2x8x384xf32, #tpu.memory_space<vmem>>, vector<1x8x12xf32>
    %44 = vector.shape_cast %43 : vector<1x8x12xf32> to vector<8x12xf32>
    %45 = vector.shape_cast %42 : vector<8x12xf32> to vector<1x8x12xf32>
    tpu.vector_store %arg8[%c1_26, %c0_27, %c36_28], %45 {strides = array<i32>} : memref<2x8x384xf32, #tpu.memory_space<vmem>>, vector<1x8x12xf32>,
    %46 = vector.extract_strided_slice %9 {offsets = [32, 0], sizes = [8, 24], strides = [1, 1]} : vector<256x24xf32> to vector<8x24xf32>
    %47 = vector.extract_strided_slice %46 {offsets = [0, 0], sizes = [8, 12], strides = [1, 1]} : vector<8x24xf32> to vector<8x12xf32>
    %c0_29 = arith.constant 0 : index
    %c0_30 = arith.constant 0 : index
    %c48 = arith.constant 48 : index
    %48 = vector.load %arg8[%c0_29, %c0_30, %c48] : memref<2x8x384xf32, #tpu.memory_space<vmem>>, vector<1x8x12xf32>
    %49 = vector.shape_cast %48 : vector<1x8x12xf32> to vector<8x12xf32>
    %50 = vector.shape_cast %47 : vector<8x12xf32> to vector<1x8x12xf32>
    tpu.vector_store %arg8[%c0_29, %c0_30, %c48], %50 {strides = array<i32>} : memref<2x8x384xf32, #tpu.memory_space<vmem>>, vector<1x8x12xf32>,
    %51 = vector.extract_strided_slice %46 {offsets = [0, 12], sizes = [8, 12], strides = [1, 1]} : vector<8x24xf32> to vector<8x12xf32>
    %c1_31 = arith.constant 1 : index
    %c0_32 = arith.constant 0 : index
    %c48_33 = arith.constant 48 : index
    %52 = vector.load %arg8[%c1_31, %c0_32, %c48_33] : memref<2x8x384xf32, #tpu.memory_space<vmem>>, vector<1x8x12xf32>
    %53 = vector.shape_cast %52 : vector<1x8x12xf32> to vector<8x12xf32>
    %54 = vector.shape_cast %51 : vector<8x12xf32> to vector<1x8x12xf32>
    tpu.vector_store %arg8[%c1_31, %c0_32, %c48_33], %54 {strides = array<i32>} : memref<2x8x384xf32, #tpu.memory_space<vmem>>, vector<1x8x12xf32>,
    %55 = vector.extract_strided_slice %9 {offsets = [40, 0], sizes = [8, 24], strides = [1, 1]} : vector<256x24xf32> to vector<8x24xf32>
    %56 = vector.extract_strided_slice %55 {offsets = [0, 0], sizes = [8, 12], strides = [1, 1]} : vector<8x24xf32> to vector<8x12xf32>
    %c0_34 = arith.constant 0 : index
    %c0_35 = arith.constant 0 : index
    %c60 = arith.constant 60 : index
    %57 = vector.load %arg8[%c0_34, %c0_35, %c60] : memref<2x8x384xf32, #tpu.memory_space<vmem>>, vector<1x8x12xf32>
    %58 = vector.shape_cast %57 : vector<1x8x12xf32> to vector<8x12xf32>
    %59 = vector.shape_cast %56 : vector<8x12xf32> to vector<1x8x12xf32>
    tpu.vector_store %arg8[%c0_34, %c0_35, %c60], %59 {strides = array<i32>} : memref<2x8x384xf32, #tpu.memory_space<vmem>>, vector<1x8x12xf32>,
    %60 = vector.extract_strided_slice %55 {offsets = [0, 12], sizes = [8, 12], strides = [1, 1]} : vector<8x24xf32> to vector<8x12xf32>
    %c1_36 = arith.constant 1 : index
    %c0_37 = arith.constant 0 : index
    %c60_38 = arith.constant 60 : index
    %61 = vector.load %arg8[%c1_36, %c0_37, %c60_38] : memref<2x8x384xf32, #tpu.memory_space<vmem>>, vector<1x8x12xf32>
    %62 = vector.shape_cast %61 : vector<1x8x12xf32> to vector<8x12xf32>
    %63 = vector.shape_cast %60 : vector<8x12xf32> to vector<1x8x12xf32>
    tpu.vector_store %arg8[%c1_36, %c0_37, %c60_38], %63 {strides = array<i32>} : memref<2x8x384xf32, #tpu.memory_space<vmem>>, vector<1x8x12xf32>,
    %64 = vector.extract_strided_slice %9 {offsets = [48, 0], sizes = [8, 24], strides = [1, 1]} : vector<256x24xf32> to vector<8x24xf32>
    %65 = vector.extract_strided_slice %64 {offsets = [0, 0], sizes = [8, 12], strides = [1, 1]} : vector<8x24xf32> to vector<8x12xf32>
    %c0_39 = arith.constant 0 : index
    %c0_40 = arith.constant 0 : index
    %c72 = arith.constant 72 : index
    %66 = vector.load %arg8[%c0_39, %c0_40, %c72] : memref<2x8x384xf32, #tpu.memory_space<vmem>>, vector<1x8x12xf32>
    %67 = vector.shape_cast %66 : vector<1x8x12xf32> to vector<8x12xf32>
    %68 = vector.shape_cast %65 : vector<8x12xf32> to vector<1x8x12xf32>
    tpu.vector_store %arg8[%c0_39, %c0_40, %c72], %68 {strides = array<i32>} : memref<2x8x384xf32, #tpu.memory_space<vmem>>, vector<1x8x12xf32>,
    %69 = vector.extract_strided_slice %64 {offsets = [0, 12], sizes = [8, 12], strides = [1, 1]} : vector<8x24xf32> to vector<8x12xf32>
    %c1_41 = arith.constant 1 : index
    %c0_42 = arith.constant 0 : index
    %c72_43 = arith.constant 72 : index
    %70 = vector.load %arg8[%c1_41, %c0_42, %c72_43] : memref<2x8x384xf32, #tpu.memory_space<vmem>>, vector<1x8x12xf32>
    %71 = vector.shape_cast %70 : vector<1x8x12xf32> to vector<8x12xf32>
    %72 = vector.shape_cast %69 : vector<8x12xf32> to vector<1x8x12xf32>
    tpu.vector_store %arg8[%c1_41, %c0_42, %c72_43], %72 {strides = array<i32>} : memref<2x8x384xf32, #tpu.memory_space<vmem>>, vector<1x8x12xf32>,
    %73 = vector.extract_strided_slice %9 {offsets = [56, 0], sizes = [8, 24], strides = [1, 1]} : vector<256x24xf32> to vector<8x24xf32>
    %74 = vector.extract_strided_slice %73 {offsets = [0, 0], sizes = [8, 12], strides = [1, 1]} : vector<8x24xf32> to vector<8x12xf32>
    %c0_44 = arith.constant 0 : index
    %c0_45 = arith.constant 0 : index
    %c84 = arith.constant 84 : index
    %75 = vector.load %arg8[%c0_44, %c0_45, %c84] : memref<2x8x384xf32, #tpu.memory_space<vmem>>, vector<1x8x12xf32>
    %76 = vector.shape_cast %75 : vector<1x8x12xf32> to vector<8x12xf32>
    %77 = vector.shape_cast %74 : vector<8x12xf32> to vector<1x8x12xf32>
    tpu.vector_store %arg8[%c0_44, %c0_45, %c84], %77 {strides = array<i32>} : memref<2x8x384xf32, #tpu.memory_space<vmem>>, vector<1x8x12xf32>,
    %78 = vector.extract_strided_slice %73 {offsets = [0, 12], sizes = [8, 12], strides = [1, 1]} : vector<8x24xf32> to vector<8x12xf32>
    %c1_46 = arith.constant 1 : index
    %c0_47 = arith.constant 0 : index
    %c84_48 = arith.constant 84 : index
    %79 = vector.load %arg8[%c1_46, %c0_47, %c84_48] : memref<2x8x384xf32, #tpu.memory_space<vmem>>, vector<1x8x12xf32>
    %80 = vector.shape_cast %79 : vector<1x8x12xf32> to vector<8x12xf32>
    %81 = vector.shape_cast %78 : vector<8x12xf32> to vector<1x8x12xf32>
    tpu.vector_store %arg8[%c1_46, %c0_47, %c84_48], %81 {strides = array<i32>} : memref<2x8x384xf32, #tpu.memory_space<vmem>>, vector<1x8x12xf32>,
    %82 = vector.extract_strided_slice %9 {offsets = [64, 0], sizes = [8, 24], strides = [1, 1]} : vector<256x24xf32> to vector<8x24xf32>
    %83 = vector.extract_strided_slice %82 {offsets = [0, 0], sizes = [8, 12], strides = [1, 1]} : vector<8x24xf32> to vector<8x12xf32>
    %c0_49 = arith.constant 0 : index
    %c0_50 = arith.constant 0 : index
    %c96 = arith.constant 96 : index
    %84 = vector.load %arg8[%c0_49, %c0_50, %c96] : memref<2x8x384xf32, #tpu.memory_space<vmem>>, vector<1x8x12xf32>
    %85 = vector.shape_cast %84 : vector<1x8x12xf32> to vector<8x12xf32>
    %86 = vector.shape_cast %83 : vector<8x12xf32> to vector<1x8x12xf32>
    tpu.vector_store %arg8[%c0_49, %c0_50, %c96], %86 {strides = array<i32>} : memref<2x8x384xf32, #tpu.memory_space<vmem>>, vector<1x8x12xf32>,
    %87 = vector.extract_strided_slice %82 {offsets = [0, 12], sizes = [8, 12], strides = [1, 1]} : vector<8x24xf32> to vector<8x12xf32>
    %c1_51 = arith.constant 1 : index
    %c0_52 = arith.constant 0 : index
    %c96_53 = arith.constant 96 : index
    %88 = vector.load %arg8[%c1_51, %c0_52, %c96_53] : memref<2x8x384xf32, #tpu.memory_space<vmem>>, vector<1x8x12xf32>
    %89 = vector.shape_cast %88 : vector<1x8x12xf32> to vector<8x12xf32>
    %90 = vector.shape_cast %87 : vector<8x12xf32> to vector<1x8x12xf32>
    tpu.vector_store %arg8[%c1_51, %c0_52, %c96_53], %90 {strides = array<i32>} : memref<2x8x384xf32, #tpu.memory_space<vmem>>, vector<1x8x12xf32>,
    %91 = vector.extract_strided_slice %9 {offsets = [72, 0], sizes = [8, 24], strides = [1, 1]} : vector<256x24xf32> to vector<8x24xf32>
    %92 = vector.extract_strided_slice %91 {offsets = [0, 0], sizes = [8, 12], strides = [1, 1]} : vector<8x24xf32> to vector<8x12xf32>
    %c0_54 = arith.constant 0 : index
    %c0_55 = arith.constant 0 : index
    %c108 = arith.constant 108 : index
    %93 = vector.load %arg8[%c0_54, %c0_55, %c108] : memref<2x8x384xf32, #tpu.memory_space<vmem>>, vector<1x8x12xf32>
    %94 = vector.shape_cast %93 : vector<1x8x12xf32> to vector<8x12xf32>
    %95 = vector.shape_cast %92 : vector<8x12xf32> to vector<1x8x12xf32>
    tpu.vector_store %arg8[%c0_54, %c0_55, %c108], %95 {strides = array<i32>} : memref<2x8x384xf32, #tpu.memory_space<vmem>>, vector<1x8x12xf32>,
    %96 = vector.extract_strided_slice %91 {offsets = [0, 12], sizes = [8, 12], strides = [1, 1]} : vector<8x24xf32> to vector<8x12xf32>
    %c1_56 = arith.constant 1 : index
    %c0_57 = arith.constant 0 : index
    %c108_58 = arith.constant 108 : index
    %97 = vector.load %arg8[%c1_56, %c0_57, %c108_58] : memref<2x8x384xf32, #tpu.memory_space<vmem>>, vector<1x8x12xf32>
    %98 = vector.shape_cast %97 : vector<1x8x12xf32> to vector<8x12xf32>
    %99 = vector.shape_cast %96 : vector<8x12xf32> to vector<1x8x12xf32>
    tpu.vector_store %arg8[%c1_56, %c0_57, %c108_58], %99 {strides = array<i32>} : memref<2x8x384xf32, #tpu.memory_space<vmem>>, vector<1x8x12xf32>,
    %100 = vector.extract_strided_slice %9 {offsets = [80, 0], sizes = [8, 24], strides = [1, 1]} : vector<256x24xf32> to vector<8x24xf32>
    %101 = vector.extract_strided_slice %100 {offsets = [0, 0], sizes = [8, 12], strides = [1, 1]} : vector<8x24xf32> to vector<8x12xf32>
    %c0_59 = arith.constant 0 : index
    %c0_60 = arith.constant 0 : index
    %c120 = arith.constant 120 : index
    %102 = vector.load %arg8[%c0_59, %c0_60, %c120] : memref<2x8x384xf32, #tpu.memory_space<vmem>>, vector<1x8x12xf32>
    %103 = vector.shape_cast %102 : vector<1x8x12xf32> to vector<8x12xf32>
    %104 = vector.shape_cast %101 : vector<8x12xf32> to vector<1x8x12xf32>
    tpu.vector_store %arg8[%c0_59, %c0_60, %c120], %104 {strides = array<i32>} : memref<2x8x384xf32, #tpu.memory_space<vmem>>, vector<1x8x12xf32>,
    %105 = vector.extract_strided_slice %100 {offsets = [0, 12], sizes = [8, 12], strides = [1, 1]} : vector<8x24xf32> to vector<8x12xf32>
    %c1_61 = arith.constant 1 : index
    %c0_62 = arith.constant 0 : index
    %c120_63 = arith.constant 120 : index
    %106 = vector.load %arg8[%c1_61, %c0_62, %c120_63] : memref<2x8x384xf32, #tpu.memory_space<vmem>>, vector<1x8x12xf32>
    %107 = vector.shape_cast %106 : vector<1x8x12xf32> to vector<8x12xf32>
    %108 = vector.shape_cast %105 : vector<8x12xf32> to vector<1x8x12xf32>
    tpu.vector_store %arg8[%c1_61, %c0_62, %c120_63], %108 {strides = array<i32>} : memref<2x8x384xf32, #tpu.memory_space<vmem>>, vector<1x8x12xf32>,
    %109 = vector.extract_strided_slice %9 {offsets = [88, 0], sizes = [8, 24], strides = [1, 1]} : vector<256x24xf32> to vector<8x24xf32>
    %110 = vector.extract_strided_slice %109 {offsets = [0, 0], sizes = [8, 12], strides = [1, 1]} : vector<8x24xf32> to vector<8x12xf32>
    %c0_64 = arith.constant 0 : index
    %c0_65 = arith.constant 0 : index
    %c132 = arith.constant 132 : index
    %111 = vector.load %arg8[%c0_64, %c0_65, %c132] : memref<2x8x384xf32, #tpu.memory_space<vmem>>, vector<1x8x12xf32>
    %112 = vector.shape_cast %111 : vector<1x8x12xf32> to vector<8x12xf32>
    %113 = vector.shape_cast %110 : vector<8x12xf32> to vector<1x8x12xf32>
    tpu.vector_store %arg8[%c0_64, %c0_65, %c132], %113 {strides = array<i32>} : memref<2x8x384xf32, #tpu.memory_space<vmem>>, vector<1x8x12xf32>,
    %114 = vector.extract_strided_slice %109 {offsets = [0, 12], sizes = [8, 12], strides = [1, 1]} : vector<8x24xf32> to vector<8x12xf32>
    %c1_66 = arith.constant 1 : index
    %c0_67 = arith.constant 0 : index
    %c132_68 = arith.constant 132 : index
    %115 = vector.load %arg8[%c1_66, %c0_67, %c132_68] : memref<2x8x384xf32, #tpu.memory_space<vmem>>, vector<1x8x12xf32>
    %116 = vector.shape_cast %115 : vector<1x8x12xf32> to vector<8x12xf32>
    %117 = vector.shape_cast %114 : vector<8x12xf32> to vector<1x8x12xf32>
    tpu.vector_store %arg8[%c1_66, %c0_67, %c132_68], %117 {strides = array<i32>} : memref<2x8x384xf32, #tpu.memory_space<vmem>>, vector<1x8x12xf32>,
    %118 = vector.extract_strided_slice %9 {offsets = [96, 0], sizes = [8, 24], strides = [1, 1]} : vector<256x24xf32> to vector<8x24xf32>
    %119 = vector.extract_strided_slice %118 {offsets = [0, 0], sizes = [8, 12], strides = [1, 1]} : vector<8x24xf32> to vector<8x12xf32>
    %c0_69 = arith.constant 0 : index
    %c0_70 = arith.constant 0 : index
    %c144 = arith.constant 144 : index
    %120 = vector.load %arg8[%c0_69, %c0_70, %c144] : memref<2x8x384xf32, #tpu.memory_space<vmem>>, vector<1x8x12xf32>
    %121 = vector.shape_cast %120 : vector<1x8x12xf32> to vector<8x12xf32>
    %122 = vector.shape_cast %119 : vector<8x12xf32> to vector<1x8x12xf32>
    tpu.vector_store %arg8[%c0_69, %c0_70, %c144], %122 {strides = array<i32>} : memref<2x8x384xf32, #tpu.memory_space<vmem>>, vector<1x8x12xf32>,
    %123 = vector.extract_strided_slice %118 {offsets = [0, 12], sizes = [8, 12], strides = [1, 1]} : vector<8x24xf32> to vector<8x12xf32>
    %c1_71 = arith.constant 1 : index
    %c0_72 = arith.constant 0 : index
    %c144_73 = arith.constant 144 : index
    %124 = vector.load %arg8[%c1_71, %c0_72, %c144_73] : memref<2x8x384xf32, #tpu.memory_space<vmem>>, vector<1x8x12xf32>
    %125 = vector.shape_cast %124 : vector<1x8x12xf32> to vector<8x12xf32>
    %126 = vector.shape_cast %123 : vector<8x12xf32> to vector<1x8x12xf32>
    tpu.vector_store %arg8[%c1_71, %c0_72, %c144_73], %126 {strides = array<i32>} : memref<2x8x384xf32, #tpu.memory_space<vmem>>, vector<1x8x12xf32>,
    %127 = vector.extract_strided_slice %9 {offsets = [104, 0], sizes = [8, 24], strides = [1, 1]} : vector<256x24xf32> to vector<8x24xf32>
    %128 = vector.extract_strided_slice %127 {offsets = [0, 0], sizes = [8, 12], strides = [1, 1]} : vector<8x24xf32> to vector<8x12xf32>
    %c0_74 = arith.constant 0 : index
    %c0_75 = arith.constant 0 : index
    %c156 = arith.constant 156 : index
    %129 = vector.load %arg8[%c0_74, %c0_75, %c156] : memref<2x8x384xf32, #tpu.memory_space<vmem>>, vector<1x8x12xf32>
    %130 = vector.shape_cast %129 : vector<1x8x12xf32> to vector<8x12xf32>
    %131 = vector.shape_cast %128 : vector<8x12xf32> to vector<1x8x12xf32>
    tpu.vector_store %arg8[%c0_74, %c0_75, %c156], %131 {strides = array<i32>} : memref<2x8x384xf32, #tpu.memory_space<vmem>>, vector<1x8x12xf32>,
    %132 = vector.extract_strided_slice %127 {offsets = [0, 12], sizes = [8, 12], strides = [1, 1]} : vector<8x24xf32> to vector<8x12xf32>
    %c1_76 = arith.constant 1 : index
    %c0_77 = arith.constant 0 : index
    %c156_78 = arith.constant 156 : index
    %133 = vector.load %arg8[%c1_76, %c0_77, %c156_78] : memref<2x8x384xf32, #tpu.memory_space<vmem>>, vector<1x8x12xf32>
    %134 = vector.shape_cast %133 : vector<1x8x12xf32> to vector<8x12xf32>
    %135 = vector.shape_cast %132 : vector<8x12xf32> to vector<1x8x12xf32>
    tpu.vector_store %arg8[%c1_76, %c0_77, %c156_78], %135 {strides = array<i32>} : memref<2x8x384xf32, #tpu.memory_space<vmem>>, vector<1x8x12xf32>,
    %136 = vector.extract_strided_slice %9 {offsets = [112, 0], sizes = [8, 24], strides = [1, 1]} : vector<256x24xf32> to vector<8x24xf32>
    %137 = vector.extract_strided_slice %136 {offsets = [0, 0], sizes = [8, 12], strides = [1, 1]} : vector<8x24xf32> to vector<8x12xf32>
    %c0_79 = arith.constant 0 : index
    %c0_80 = arith.constant 0 : index
    %c168 = arith.constant 168 : index
    %138 = vector.load %arg8[%c0_79, %c0_80, %c168] : memref<2x8x384xf32, #tpu.memory_space<vmem>>, vector<1x8x12xf32>
    %139 = vector.shape_cast %138 : vector<1x8x12xf32> to vector<8x12xf32>
    %140 = vector.shape_cast %137 : vector<8x12xf32> to vector<1x8x12xf32>
    tpu.vector_store %arg8[%c0_79, %c0_80, %c168], %140 {strides = array<i32>} : memref<2x8x384xf32, #tpu.memory_space<vmem>>, vector<1x8x12xf32>,
    %141 = vector.extract_strided_slice %136 {offsets = [0, 12], sizes = [8, 12], strides = [1, 1]} : vector<8x24xf32> to vector<8x12xf32>
    %c1_81 = arith.constant 1 : index
    %c0_82 = arith.constant 0 : index
    %c168_83 = arith.constant 168 : index
    %142 = vector.load %arg8[%c1_81, %c0_82, %c168_83] : memref<2x8x384xf32, #tpu.memory_space<vmem>>, vector<1x8x12xf32>
    %143 = vector.shape_cast %142 : vector<1x8x12xf32> to vector<8x12xf32>
    %144 = vector.shape_cast %141 : vector<8x12xf32> to vector<1x8x12xf32>
    tpu.vector_store %arg8[%c1_81, %c0_82, %c168_83], %144 {strides = array<i32>} : memref<2x8x384xf32, #tpu.memory_space<vmem>>, vector<1x8x12xf32>,
    %145 = vector.extract_strided_slice %9 {offsets = [120, 0], sizes = [8, 24], strides = [1, 1]} : vector<256x24xf32> to vector<8x24xf32>
    %146 = vector.extract_strided_slice %145 {offsets = [0, 0], sizes = [8, 12], strides = [1, 1]} : vector<8x24xf32> to vector<8x12xf32>
    %c0_84 = arith.constant 0 : index
    %c0_85 = arith.constant 0 : index
    %c180 = arith.constant 180 : index
    %147 = vector.load %arg8[%c0_84, %c0_85, %c180] : memref<2x8x384xf32, #tpu.memory_space<vmem>>, vector<1x8x12xf32>
    %148 = vector.shape_cast %147 : vector<1x8x12xf32> to vector<8x12xf32>
    %149 = vector.shape_cast %146 : vector<8x12xf32> to vector<1x8x12xf32>
    tpu.vector_store %arg8[%c0_84, %c0_85, %c180], %149 {strides = array<i32>} : memref<2x8x384xf32, #tpu.memory_space<vmem>>, vector<1x8x12xf32>,
    %150 = vector.extract_strided_slice %145 {offsets = [0, 12], sizes = [8, 12], strides = [1, 1]} : vector<8x24xf32> to vector<8x12xf32>
    %c1_86 = arith.constant 1 : index
    %c0_87 = arith.constant 0 : index
    %c180_88 = arith.constant 180 : index
    %151 = vector.load %arg8[%c1_86, %c0_87, %c180_88] : memref<2x8x384xf32, #tpu.memory_space<vmem>>, vector<1x8x12xf32>
    %152 = vector.shape_cast %151 : vector<1x8x12xf32> to vector<8x12xf32>
    %153 = vector.shape_cast %150 : vector<8x12xf32> to vector<1x8x12xf32>
    tpu.vector_store %arg8[%c1_86, %c0_87, %c180_88], %153 {strides = array<i32>} : memref<2x8x384xf32, #tpu.memory_space<vmem>>, vector<1x8x12xf32>,
    %154 = vector.extract_strided_slice %9 {offsets = [128, 0], sizes = [8, 24], strides = [1, 1]} : vector<256x24xf32> to vector<8x24xf32>
    %155 = vector.extract_strided_slice %154 {offsets = [0, 0], sizes = [8, 12], strides = [1, 1]} : vector<8x24xf32> to vector<8x12xf32>
    %c0_89 = arith.constant 0 : index
    %c0_90 = arith.constant 0 : index
    %c192 = arith.constant 192 : index
    %156 = vector.load %arg8[%c0_89, %c0_90, %c192] : memref<2x8x384xf32, #tpu.memory_space<vmem>>, vector<1x8x12xf32>
    %157 = vector.shape_cast %156 : vector<1x8x12xf32> to vector<8x12xf32>
    %158 = vector.shape_cast %155 : vector<8x12xf32> to vector<1x8x12xf32>
    tpu.vector_store %arg8[%c0_89, %c0_90, %c192], %158 {strides = array<i32>} : memref<2x8x384xf32, #tpu.memory_space<vmem>>, vector<1x8x12xf32>,
    %159 = vector.extract_strided_slice %154 {offsets = [0, 12], sizes = [8, 12], strides = [1, 1]} : vector<8x24xf32> to vector<8x12xf32>
    %c1_91 = arith.constant 1 : index
    %c0_92 = arith.constant 0 : index
    %c192_93 = arith.constant 192 : index
    %160 = vector.load %arg8[%c1_91, %c0_92, %c192_93] : memref<2x8x384xf32, #tpu.memory_space<vmem>>, vector<1x8x12xf32>
    %161 = vector.shape_cast %160 : vector<1x8x12xf32> to vector<8x12xf32>
    %162 = vector.shape_cast %159 : vector<8x12xf32> to vector<1x8x12xf32>
    tpu.vector_store %arg8[%c1_91, %c0_92, %c192_93], %162 {strides = array<i32>} : memref<2x8x384xf32, #tpu.memory_space<vmem>>, vector<1x8x12xf32>,
    %163 = vector.extract_strided_slice %9 {offsets = [136, 0], sizes = [8, 24], strides = [1, 1]} : vector<256x24xf32> to vector<8x24xf32>
    %164 = vector.extract_strided_slice %163 {offsets = [0, 0], sizes = [8, 12], strides = [1, 1]} : vector<8x24xf32> to vector<8x12xf32>
    %c0_94 = arith.constant 0 : index
    %c0_95 = arith.constant 0 : index
    %c204 = arith.constant 204 : index
    %165 = vector.load %arg8[%c0_94, %c0_95, %c204] : memref<2x8x384xf32, #tpu.memory_space<vmem>>, vector<1x8x12xf32>
    %166 = vector.shape_cast %165 : vector<1x8x12xf32> to vector<8x12xf32>
    %167 = vector.shape_cast %164 : vector<8x12xf32> to vector<1x8x12xf32>
    tpu.vector_store %arg8[%c0_94, %c0_95, %c204], %167 {strides = array<i32>} : memref<2x8x384xf32, #tpu.memory_space<vmem>>, vector<1x8x12xf32>,
    %168 = vector.extract_strided_slice %163 {offsets = [0, 12], sizes = [8, 12], strides = [1, 1]} : vector<8x24xf32> to vector<8x12xf32>
    %c1_96 = arith.constant 1 : index
    %c0_97 = arith.constant 0 : index
    %c204_98 = arith.constant 204 : index
    %169 = vector.load %arg8[%c1_96, %c0_97, %c204_98] : memref<2x8x384xf32, #tpu.memory_space<vmem>>, vector<1x8x12xf32>
    %170 = vector.shape_cast %169 : vector<1x8x12xf32> to vector<8x12xf32>
    %171 = vector.shape_cast %168 : vector<8x12xf32> to vector<1x8x12xf32>
    tpu.vector_store %arg8[%c1_96, %c0_97, %c204_98], %171 {strides = array<i32>} : memref<2x8x384xf32, #tpu.memory_space<vmem>>, vector<1x8x12xf32>,
    %172 = vector.extract_strided_slice %9 {offsets = [144, 0], sizes = [8, 24], strides = [1, 1]} : vector<256x24xf32> to vector<8x24xf32>
    %173 = vector.extract_strided_slice %172 {offsets = [0, 0], sizes = [8, 12], strides = [1, 1]} : vector<8x24xf32> to vector<8x12xf32>
    %c0_99 = arith.constant 0 : index
    %c0_100 = arith.constant 0 : index
    %c216 = arith.constant 216 : index
    %174 = vector.load %arg8[%c0_99, %c0_100, %c216] : memref<2x8x384xf32, #tpu.memory_space<vmem>>, vector<1x8x12xf32>
    %175 = vector.shape_cast %174 : vector<1x8x12xf32> to vector<8x12xf32>
    %176 = vector.shape_cast %173 : vector<8x12xf32> to vector<1x8x12xf32>
    tpu.vector_store %arg8[%c0_99, %c0_100, %c216], %176 {strides = array<i32>} : memref<2x8x384xf32, #tpu.memory_space<vmem>>, vector<1x8x12xf32>,
    %177 = vector.extract_strided_slice %172 {offsets = [0, 12], sizes = [8, 12], strides = [1, 1]} : vector<8x24xf32> to vector<8x12xf32>
    %c1_101 = arith.constant 1 : index
    %c0_102 = arith.constant 0 : index
    %c216_103 = arith.constant 216 : index
    %178 = vector.load %arg8[%c1_101, %c0_102, %c216_103] : memref<2x8x384xf32, #tpu.memory_space<vmem>>, vector<1x8x12xf32>
    %179 = vector.shape_cast %178 : vector<1x8x12xf32> to vector<8x12xf32>
    %180 = vector.shape_cast %177 : vector<8x12xf32> to vector<1x8x12xf32>
    tpu.vector_store %arg8[%c1_101, %c0_102, %c216_103], %180 {strides = array<i32>} : memref<2x8x384xf32, #tpu.memory_space<vmem>>, vector<1x8x12xf32>,
    %181 = vector.extract_strided_slice %9 {offsets = [152, 0], sizes = [8, 24], strides = [1, 1]} : vector<256x24xf32> to vector<8x24xf32>
    %182 = vector.extract_strided_slice %181 {offsets = [0, 0], sizes = [8, 12], strides = [1, 1]} : vector<8x24xf32> to vector<8x12xf32>
    %c0_104 = arith.constant 0 : index
    %c0_105 = arith.constant 0 : index
    %c228 = arith.constant 228 : index
    %183 = vector.load %arg8[%c0_104, %c0_105, %c228] : memref<2x8x384xf32, #tpu.memory_space<vmem>>, vector<1x8x12xf32>
    %184 = vector.shape_cast %183 : vector<1x8x12xf32> to vector<8x12xf32>
    %185 = vector.shape_cast %182 : vector<8x12xf32> to vector<1x8x12xf32>
    tpu.vector_store %arg8[%c0_104, %c0_105, %c228], %185 {strides = array<i32>} : memref<2x8x384xf32, #tpu.memory_space<vmem>>, vector<1x8x12xf32>,
    %186 = vector.extract_strided_slice %181 {offsets = [0, 12], sizes = [8, 12], strides = [1, 1]} : vector<8x24xf32> to vector<8x12xf32>
    %c1_106 = arith.constant 1 : index
    %c0_107 = arith.constant 0 : index
    %c228_108 = arith.constant 228 : index
    %187 = vector.load %arg8[%c1_106, %c0_107, %c228_108] : memref<2x8x384xf32, #tpu.memory_space<vmem>>, vector<1x8x12xf32>
    %188 = vector.shape_cast %187 : vector<1x8x12xf32> to vector<8x12xf32>
    %189 = vector.shape_cast %186 : vector<8x12xf32> to vector<1x8x12xf32>
    tpu.vector_store %arg8[%c1_106, %c0_107, %c228_108], %189 {strides = array<i32>} : memref<2x8x384xf32, #tpu.memory_space<vmem>>, vector<1x8x12xf32>,
    %190 = vector.extract_strided_slice %9 {offsets = [160, 0], sizes = [8, 24], strides = [1, 1]} : vector<256x24xf32> to vector<8x24xf32>
    %191 = vector.extract_strided_slice %190 {offsets = [0, 0], sizes = [8, 12], strides = [1, 1]} : vector<8x24xf32> to vector<8x12xf32>
    %c0_109 = arith.constant 0 : index
    %c0_110 = arith.constant 0 : index
    %c240 = arith.constant 240 : index
    %192 = vector.load %arg8[%c0_109, %c0_110, %c240] : memref<2x8x384xf32, #tpu.memory_space<vmem>>, vector<1x8x12xf32>
    %193 = vector.shape_cast %192 : vector<1x8x12xf32> to vector<8x12xf32>
    %194 = vector.shape_cast %191 : vector<8x12xf32> to vector<1x8x12xf32>
    tpu.vector_store %arg8[%c0_109, %c0_110, %c240], %194 {strides = array<i32>} : memref<2x8x384xf32, #tpu.memory_space<vmem>>, vector<1x8x12xf32>,
    %195 = vector.extract_strided_slice %190 {offsets = [0, 12], sizes = [8, 12], strides = [1, 1]} : vector<8x24xf32> to vector<8x12xf32>
    %c1_111 = arith.constant 1 : index
    %c0_112 = arith.constant 0 : index
    %c240_113 = arith.constant 240 : index
    %196 = vector.load %arg8[%c1_111, %c0_112, %c240_113] : memref<2x8x384xf32, #tpu.memory_space<vmem>>, vector<1x8x12xf32>
    %197 = vector.shape_cast %196 : vector<1x8x12xf32> to vector<8x12xf32>
    %198 = vector.shape_cast %195 : vector<8x12xf32> to vector<1x8x12xf32>
    tpu.vector_store %arg8[%c1_111, %c0_112, %c240_113], %198 {strides = array<i32>} : memref<2x8x384xf32, #tpu.memory_space<vmem>>, vector<1x8x12xf32>,
    %199 = vector.extract_strided_slice %9 {offsets = [168, 0], sizes = [8, 24], strides = [1, 1]} : vector<256x24xf32> to vector<8x24xf32>
    %200 = vector.extract_strided_slice %199 {offsets = [0, 0], sizes = [8, 12], strides = [1, 1]} : vector<8x24xf32> to vector<8x12xf32>
    %c0_114 = arith.constant 0 : index
    %c0_115 = arith.constant 0 : index
    %c252 = arith.constant 252 : index
    %201 = vector.load %arg8[%c0_114, %c0_115, %c252] : memref<2x8x384xf32, #tpu.memory_space<vmem>>, vector<1x8x12xf32>
    %202 = vector.shape_cast %201 : vector<1x8x12xf32> to vector<8x12xf32>
    %203 = vector.shape_cast %200 : vector<8x12xf32> to vector<1x8x12xf32>
    tpu.vector_store %arg8[%c0_114, %c0_115, %c252], %203 {strides = array<i32>} : memref<2x8x384xf32, #tpu.memory_space<vmem>>, vector<1x8x12xf32>,
    %204 = vector.extract_strided_slice %199 {offsets = [0, 12], sizes = [8, 12], strides = [1, 1]} : vector<8x24xf32> to vector<8x12xf32>
    %c1_116 = arith.constant 1 : index
    %c0_117 = arith.constant 0 : index
    %c252_118 = arith.constant 252 : index
    %205 = vector.load %arg8[%c1_116, %c0_117, %c252_118] : memref<2x8x384xf32, #tpu.memory_space<vmem>>, vector<1x8x12xf32>
    %206 = vector.shape_cast %205 : vector<1x8x12xf32> to vector<8x12xf32>
    %207 = vector.shape_cast %204 : vector<8x12xf32> to vector<1x8x12xf32>
    tpu.vector_store %arg8[%c1_116, %c0_117, %c252_118], %207 {strides = array<i32>} : memref<2x8x384xf32, #tpu.memory_space<vmem>>, vector<1x8x12xf32>,
    %208 = vector.extract_strided_slice %9 {offsets = [176, 0], sizes = [8, 24], strides = [1, 1]} : vector<256x24xf32> to vector<8x24xf32>
    %209 = vector.extract_strided_slice %208 {offsets = [0, 0], sizes = [8, 12], strides = [1, 1]} : vector<8x24xf32> to vector<8x12xf32>
    %c0_119 = arith.constant 0 : index
    %c0_120 = arith.constant 0 : index
    %c264 = arith.constant 264 : index
    %210 = vector.load %arg8[%c0_119, %c0_120, %c264] : memref<2x8x384xf32, #tpu.memory_space<vmem>>, vector<1x8x12xf32>
    %211 = vector.shape_cast %210 : vector<1x8x12xf32> to vector<8x12xf32>
    %212 = vector.shape_cast %209 : vector<8x12xf32> to vector<1x8x12xf32>
    tpu.vector_store %arg8[%c0_119, %c0_120, %c264], %212 {strides = array<i32>} : memref<2x8x384xf32, #tpu.memory_space<vmem>>, vector<1x8x12xf32>,
    %213 = vector.extract_strided_slice %208 {offsets = [0, 12], sizes = [8, 12], strides = [1, 1]} : vector<8x24xf32> to vector<8x12xf32>
    %c1_121 = arith.constant 1 : index
    %c0_122 = arith.constant 0 : index
    %c264_123 = arith.constant 264 : index
    %214 = vector.load %arg8[%c1_121, %c0_122, %c264_123] : memref<2x8x384xf32, #tpu.memory_space<vmem>>, vector<1x8x12xf32>
    %215 = vector.shape_cast %214 : vector<1x8x12xf32> to vector<8x12xf32>
    %216 = vector.shape_cast %213 : vector<8x12xf32> to vector<1x8x12xf32>
    tpu.vector_store %arg8[%c1_121, %c0_122, %c264_123], %216 {strides = array<i32>} : memref<2x8x384xf32, #tpu.memory_space<vmem>>, vector<1x8x12xf32>,
    %217 = vector.extract_strided_slice %9 {offsets = [184, 0], sizes = [8, 24], strides = [1, 1]} : vector<256x24xf32> to vector<8x24xf32>
    %218 = vector.extract_strided_slice %217 {offsets = [0, 0], sizes = [8, 12], strides = [1, 1]} : vector<8x24xf32> to vector<8x12xf32>
    %c0_124 = arith.constant 0 : index
    %c0_125 = arith.constant 0 : index
    %c276 = arith.constant 276 : index
    %219 = vector.load %arg8[%c0_124, %c0_125, %c276] : memref<2x8x384xf32, #tpu.memory_space<vmem>>, vector<1x8x12xf32>
    %220 = vector.shape_cast %219 : vector<1x8x12xf32> to vector<8x12xf32>
    %221 = vector.shape_cast %218 : vector<8x12xf32> to vector<1x8x12xf32>
    tpu.vector_store %arg8[%c0_124, %c0_125, %c276], %221 {strides = array<i32>} : memref<2x8x384xf32, #tpu.memory_space<vmem>>, vector<1x8x12xf32>,
    %222 = vector.extract_strided_slice %217 {offsets = [0, 12], sizes = [8, 12], strides = [1, 1]} : vector<8x24xf32> to vector<8x12xf32>
    %c1_126 = arith.constant 1 : index
    %c0_127 = arith.constant 0 : index
    %c276_128 = arith.constant 276 : index
    %223 = vector.load %arg8[%c1_126, %c0_127, %c276_128] : memref<2x8x384xf32, #tpu.memory_space<vmem>>, vector<1x8x12xf32>
    %224 = vector.shape_cast %223 : vector<1x8x12xf32> to vector<8x12xf32>
    %225 = vector.shape_cast %222 : vector<8x12xf32> to vector<1x8x12xf32>
    tpu.vector_store %arg8[%c1_126, %c0_127, %c276_128], %225 {strides = array<i32>} : memref<2x8x384xf32, #tpu.memory_space<vmem>>, vector<1x8x12xf32>,
    %226 = vector.extract_strided_slice %9 {offsets = [192, 0], sizes = [8, 24], strides = [1, 1]} : vector<256x24xf32> to vector<8x24xf32>
    %227 = vector.extract_strided_slice %226 {offsets = [0, 0], sizes = [8, 12], strides = [1, 1]} : vector<8x24xf32> to vector<8x12xf32>
    %c0_129 = arith.constant 0 : index
    %c0_130 = arith.constant 0 : index
    %c288 = arith.constant 288 : index
    %228 = vector.load %arg8[%c0_129, %c0_130, %c288] : memref<2x8x384xf32, #tpu.memory_space<vmem>>, vector<1x8x12xf32>
    %229 = vector.shape_cast %228 : vector<1x8x12xf32> to vector<8x12xf32>
    %230 = vector.shape_cast %227 : vector<8x12xf32> to vector<1x8x12xf32>
    tpu.vector_store %arg8[%c0_129, %c0_130, %c288], %230 {strides = array<i32>} : memref<2x8x384xf32, #tpu.memory_space<vmem>>, vector<1x8x12xf32>,
    %231 = vector.extract_strided_slice %226 {offsets = [0, 12], sizes = [8, 12], strides = [1, 1]} : vector<8x24xf32> to vector<8x12xf32>
    %c1_131 = arith.constant 1 : index
    %c0_132 = arith.constant 0 : index
    %c288_133 = arith.constant 288 : index
    %232 = vector.load %arg8[%c1_131, %c0_132, %c288_133] : memref<2x8x384xf32, #tpu.memory_space<vmem>>, vector<1x8x12xf32>
    %233 = vector.shape_cast %232 : vector<1x8x12xf32> to vector<8x12xf32>
    %234 = vector.shape_cast %231 : vector<8x12xf32> to vector<1x8x12xf32>
    tpu.vector_store %arg8[%c1_131, %c0_132, %c288_133], %234 {strides = array<i32>} : memref<2x8x384xf32, #tpu.memory_space<vmem>>, vector<1x8x12xf32>,
    %235 = vector.extract_strided_slice %9 {offsets = [200, 0], sizes = [8, 24], strides = [1, 1]} : vector<256x24xf32> to vector<8x24xf32>
    %236 = vector.extract_strided_slice %235 {offsets = [0, 0], sizes = [8, 12], strides = [1, 1]} : vector<8x24xf32> to vector<8x12xf32>
    %c0_134 = arith.constant 0 : index
    %c0_135 = arith.constant 0 : index
    %c300 = arith.constant 300 : index
    %237 = vector.load %arg8[%c0_134, %c0_135, %c300] : memref<2x8x384xf32, #tpu.memory_space<vmem>>, vector<1x8x12xf32>
    %238 = vector.shape_cast %237 : vector<1x8x12xf32> to vector<8x12xf32>
    %239 = vector.shape_cast %236 : vector<8x12xf32> to vector<1x8x12xf32>
    tpu.vector_store %arg8[%c0_134, %c0_135, %c300], %239 {strides = array<i32>} : memref<2x8x384xf32, #tpu.memory_space<vmem>>, vector<1x8x12xf32>,
    %240 = vector.extract_strided_slice %235 {offsets = [0, 12], sizes = [8, 12], strides = [1, 1]} : vector<8x24xf32> to vector<8x12xf32>
    %c1_136 = arith.constant 1 : index
    %c0_137 = arith.constant 0 : index
    %c300_138 = arith.constant 300 : index
    %241 = vector.load %arg8[%c1_136, %c0_137, %c300_138] : memref<2x8x384xf32, #tpu.memory_space<vmem>>, vector<1x8x12xf32>
    %242 = vector.shape_cast %241 : vector<1x8x12xf32> to vector<8x12xf32>
    %243 = vector.shape_cast %240 : vector<8x12xf32> to vector<1x8x12xf32>
    tpu.vector_store %arg8[%c1_136, %c0_137, %c300_138], %243 {strides = array<i32>} : memref<2x8x384xf32, #tpu.memory_space<vmem>>, vector<1x8x12xf32>,
    %244 = vector.extract_strided_slice %9 {offsets = [208, 0], sizes = [8, 24], strides = [1, 1]} : vector<256x24xf32> to vector<8x24xf32>
    %245 = vector.extract_strided_slice %244 {offsets = [0, 0], sizes = [8, 12], strides = [1, 1]} : vector<8x24xf32> to vector<8x12xf32>
    %c0_139 = arith.constant 0 : index
    %c0_140 = arith.constant 0 : index
    %c312 = arith.constant 312 : index
    %246 = vector.load %arg8[%c0_139, %c0_140, %c312] : memref<2x8x384xf32, #tpu.memory_space<vmem>>, vector<1x8x12xf32>
    %247 = vector.shape_cast %246 : vector<1x8x12xf32> to vector<8x12xf32>
    %248 = vector.shape_cast %245 : vector<8x12xf32> to vector<1x8x12xf32>
    tpu.vector_store %arg8[%c0_139, %c0_140, %c312], %248 {strides = array<i32>} : memref<2x8x384xf32, #tpu.memory_space<vmem>>, vector<1x8x12xf32>,
    %249 = vector.extract_strided_slice %244 {offsets = [0, 12], sizes = [8, 12], strides = [1, 1]} : vector<8x24xf32> to vector<8x12xf32>
    %c1_141 = arith.constant 1 : index
    %c0_142 = arith.constant 0 : index
    %c312_143 = arith.constant 312 : index
    %250 = vector.load %arg8[%c1_141, %c0_142, %c312_143] : memref<2x8x384xf32, #tpu.memory_space<vmem>>, vector<1x8x12xf32>
    %251 = vector.shape_cast %250 : vector<1x8x12xf32> to vector<8x12xf32>
    %252 = vector.shape_cast %249 : vector<8x12xf32> to vector<1x8x12xf32>
    tpu.vector_store %arg8[%c1_141, %c0_142, %c312_143], %252 {strides = array<i32>} : memref<2x8x384xf32, #tpu.memory_space<vmem>>, vector<1x8x12xf32>,
    %253 = vector.extract_strided_slice %9 {offsets = [216, 0], sizes = [8, 24], strides = [1, 1]} : vector<256x24xf32> to vector<8x24xf32>
    %254 = vector.extract_strided_slice %253 {offsets = [0, 0], sizes = [8, 12], strides = [1, 1]} : vector<8x24xf32> to vector<8x12xf32>
    %c0_144 = arith.constant 0 : index
    %c0_145 = arith.constant 0 : index
    %c324 = arith.constant 324 : index
    %255 = vector.load %arg8[%c0_144, %c0_145, %c324] : memref<2x8x384xf32, #tpu.memory_space<vmem>>, vector<1x8x12xf32>
    %256 = vector.shape_cast %255 : vector<1x8x12xf32> to vector<8x12xf32>
    %257 = vector.shape_cast %254 : vector<8x12xf32> to vector<1x8x12xf32>
    tpu.vector_store %arg8[%c0_144, %c0_145, %c324], %257 {strides = array<i32>} : memref<2x8x384xf32, #tpu.memory_space<vmem>>, vector<1x8x12xf32>,
    %258 = vector.extract_strided_slice %253 {offsets = [0, 12], sizes = [8, 12], strides = [1, 1]} : vector<8x24xf32> to vector<8x12xf32>
    %c1_146 = arith.constant 1 : index
    %c0_147 = arith.constant 0 : index
    %c324_148 = arith.constant 324 : index
    %259 = vector.load %arg8[%c1_146, %c0_147, %c324_148] : memref<2x8x384xf32, #tpu.memory_space<vmem>>, vector<1x8x12xf32>
    %260 = vector.shape_cast %259 : vector<1x8x12xf32> to vector<8x12xf32>
    %261 = vector.shape_cast %258 : vector<8x12xf32> to vector<1x8x12xf32>
    tpu.vector_store %arg8[%c1_146, %c0_147, %c324_148], %261 {strides = array<i32>} : memref<2x8x384xf32, #tpu.memory_space<vmem>>, vector<1x8x12xf32>,
    %262 = vector.extract_strided_slice %9 {offsets = [224, 0], sizes = [8, 24], strides = [1, 1]} : vector<256x24xf32> to vector<8x24xf32>
    %263 = vector.extract_strided_slice %262 {offsets = [0, 0], sizes = [8, 12], strides = [1, 1]} : vector<8x24xf32> to vector<8x12xf32>
    %c0_149 = arith.constant 0 : index
    %c0_150 = arith.constant 0 : index
    %c336 = arith.constant 336 : index
    %264 = vector.load %arg8[%c0_149, %c0_150, %c336] : memref<2x8x384xf32, #tpu.memory_space<vmem>>, vector<1x8x12xf32>
    %265 = vector.shape_cast %264 : vector<1x8x12xf32> to vector<8x12xf32>
    %266 = vector.shape_cast %263 : vector<8x12xf32> to vector<1x8x12xf32>
    tpu.vector_store %arg8[%c0_149, %c0_150, %c336], %266 {strides = array<i32>} : memref<2x8x384xf32, #tpu.memory_space<vmem>>, vector<1x8x12xf32>,
    %267 = vector.extract_strided_slice %262 {offsets = [0, 12], sizes = [8, 12], strides = [1, 1]} : vector<8x24xf32> to vector<8x12xf32>
    %c1_151 = arith.constant 1 : index
    %c0_152 = arith.constant 0 : index
    %c336_153 = arith.constant 336 : index
    %268 = vector.load %arg8[%c1_151, %c0_152, %c336_153] : memref<2x8x384xf32, #tpu.memory_space<vmem>>, vector<1x8x12xf32>
    %269 = vector.shape_cast %268 : vector<1x8x12xf32> to vector<8x12xf32>
    %270 = vector.shape_cast %267 : vector<8x12xf32> to vector<1x8x12xf32>
    tpu.vector_store %arg8[%c1_151, %c0_152, %c336_153], %270 {strides = array<i32>} : memref<2x8x384xf32, #tpu.memory_space<vmem>>, vector<1x8x12xf32>,
    %271 = vector.extract_strided_slice %9 {offsets = [232, 0], sizes = [8, 24], strides = [1, 1]} : vector<256x24xf32> to vector<8x24xf32>
    %272 = vector.extract_strided_slice %271 {offsets = [0, 0], sizes = [8, 12], strides = [1, 1]} : vector<8x24xf32> to vector<8x12xf32>
    %c0_154 = arith.constant 0 : index
    %c0_155 = arith.constant 0 : index
    %c348 = arith.constant 348 : index
    %273 = vector.load %arg8[%c0_154, %c0_155, %c348] : memref<2x8x384xf32, #tpu.memory_space<vmem>>, vector<1x8x12xf32>
    %274 = vector.shape_cast %273 : vector<1x8x12xf32> to vector<8x12xf32>
    %275 = vector.shape_cast %272 : vector<8x12xf32> to vector<1x8x12xf32>
    tpu.vector_store %arg8[%c0_154, %c0_155, %c348], %275 {strides = array<i32>} : memref<2x8x384xf32, #tpu.memory_space<vmem>>, vector<1x8x12xf32>,
    %276 = vector.extract_strided_slice %271 {offsets = [0, 12], sizes = [8, 12], strides = [1, 1]} : vector<8x24xf32> to vector<8x12xf32>
    %c1_156 = arith.constant 1 : index
    %c0_157 = arith.constant 0 : index
    %c348_158 = arith.constant 348 : index
    %277 = vector.load %arg8[%c1_156, %c0_157, %c348_158] : memref<2x8x384xf32, #tpu.memory_space<vmem>>, vector<1x8x12xf32>
    %278 = vector.shape_cast %277 : vector<1x8x12xf32> to vector<8x12xf32>
    %279 = vector.shape_cast %276 : vector<8x12xf32> to vector<1x8x12xf32>
    tpu.vector_store %arg8[%c1_156, %c0_157, %c348_158], %279 {strides = array<i32>} : memref<2x8x384xf32, #tpu.memory_space<vmem>>, vector<1x8x12xf32>,
    %280 = vector.extract_strided_slice %9 {offsets = [240, 0], sizes = [8, 24], strides = [1, 1]} : vector<256x24xf32> to vector<8x24xf32>
    %281 = vector.extract_strided_slice %280 {offsets = [0, 0], sizes = [8, 12], strides = [1, 1]} : vector<8x24xf32> to vector<8x12xf32>
    %c0_159 = arith.constant 0 : index
    %c0_160 = arith.constant 0 : index
    %c360 = arith.constant 360 : index
    %282 = vector.load %arg8[%c0_159, %c0_160, %c360] : memref<2x8x384xf32, #tpu.memory_space<vmem>>, vector<1x8x12xf32>
    %283 = vector.shape_cast %282 : vector<1x8x12xf32> to vector<8x12xf32>
    %284 = vector.shape_cast %281 : vector<8x12xf32> to vector<1x8x12xf32>
    tpu.vector_store %arg8[%c0_159, %c0_160, %c360], %284 {strides = array<i32>} : memref<2x8x384xf32, #tpu.memory_space<vmem>>, vector<1x8x12xf32>,
    %285 = vector.extract_strided_slice %280 {offsets = [0, 12], sizes = [8, 12], strides = [1, 1]} : vector<8x24xf32> to vector<8x12xf32>
    %c1_161 = arith.constant 1 : index
    %c0_162 = arith.constant 0 : index
    %c360_163 = arith.constant 360 : index
    %286 = vector.load %arg8[%c1_161, %c0_162, %c360_163] : memref<2x8x384xf32, #tpu.memory_space<vmem>>, vector<1x8x12xf32>
    %287 = vector.shape_cast %286 : vector<1x8x12xf32> to vector<8x12xf32>
    %288 = vector.shape_cast %285 : vector<8x12xf32> to vector<1x8x12xf32>
    tpu.vector_store %arg8[%c1_161, %c0_162, %c360_163], %288 {strides = array<i32>} : memref<2x8x384xf32, #tpu.memory_space<vmem>>, vector<1x8x12xf32>,
    %289 = vector.extract_strided_slice %9 {offsets = [248, 0], sizes = [8, 24], strides = [1, 1]} : vector<256x24xf32> to vector<8x24xf32>
    %290 = vector.extract_strided_slice %289 {offsets = [0, 0], sizes = [8, 12], strides = [1, 1]} : vector<8x24xf32> to vector<8x12xf32>
    %c0_164 = arith.constant 0 : index
    %c0_165 = arith.constant 0 : index
    %c372 = arith.constant 372 : index
    %291 = vector.load %arg8[%c0_164, %c0_165, %c372] : memref<2x8x384xf32, #tpu.memory_space<vmem>>, vector<1x8x12xf32>
    %292 = vector.shape_cast %291 : vector<1x8x12xf32> to vector<8x12xf32>
    %293 = vector.shape_cast %290 : vector<8x12xf32> to vector<1x8x12xf32>
    tpu.vector_store %arg8[%c0_164, %c0_165, %c372], %293 {strides = array<i32>} : memref<2x8x384xf32, #tpu.memory_space<vmem>>, vector<1x8x12xf32>,
    %294 = vector.extract_strided_slice %289 {offsets = [0, 12], sizes = [8, 12], strides = [1, 1]} : vector<8x24xf32> to vector<8x12xf32>
    %c1_166 = arith.constant 1 : index
    %c0_167 = arith.constant 0 : index
    %c372_168 = arith.constant 372 : index
    %295 = vector.load %arg8[%c1_166, %c0_167, %c372_168] : memref<2x8x384xf32, #tpu.memory_space<vmem>>, vector<1x8x12xf32>
    %296 = vector.shape_cast %295 : vector<1x8x12xf32> to vector<8x12xf32>
    %297 = vector.shape_cast %294 : vector<8x12xf32> to vector<1x8x12xf32>
    tpu.vector_store %arg8[%c1_166, %c0_167, %c372_168], %297 {strides = array<i32>} : memref<2x8x384xf32, #tpu.memory_space<vmem>>, vector<1x8x12xf32>,
    %cst_169 = arith.constant 0.000000e+00 : f32
    %298 = vector.broadcast %cst_169 : f32 to vector<24x128xf32>
    %c0_170 = arith.constant 0 : index
    %c0_171 = arith.constant 0 : index
    %299 = vector.load %arg7[%c0_170, %c0_171] : memref<24x128xf32, #tpu.memory_space<vmem>>, vector<24x128xf32>
    tpu.vector_store %arg7[%c0_170, %c0_171], %298 {strides = array<i32>} : memref<24x128xf32, #tpu.memory_space<vmem>>, vector<24x128xf32>,
    %c0_172 = arith.constant 0 : index
    %300 = memref.load %arg0[%c0_172] : memref<2xi32, #tpu.memory_space<smem>>
    %301 = arith.index_cast %300 : i32 to index
    %c0_173 = arith.constant 0 : index
    %c0_174 = arith.constant 0 : index
    %302 = vector.load %arg5[%301, %c0_173, %c0_174] : memref<3x12x384xf32, #tpu.memory_space<vmem>>, vector<1x12x384xf32>
    %303 = vector.shape_cast %302 : vector<1x12x384xf32> to vector<12x384xf32>
    %c0_175 = arith.constant 0 : index
    %c0_176 = arith.constant 0 : index
    %c0_177 = arith.constant 0 : index
    %304 = vector.load %arg8[%c0_175, %c0_176, %c0_177] : memref<2x8x384xf32, #tpu.memory_space<vmem>>, vector<1x8x384xf32>
    %305 = vector.shape_cast %304 : vector<1x8x384xf32> to vector<8x384xf32>
    %cst_178 = arith.constant 0.000000e+00 : f32
    %306 = vector.broadcast %cst_178 : f32 to vector<8x384xf32>
    %307 = arith.maximumf %305, %306 : vector<8x384xf32>
    %cst_179 = arith.constant dense<0.000000e+00> : vector<12x8xf32>
    %308 = tpu.matmul %303, %307, %cst_179 {dimension_numbers = #tpu.dot_dimension_numbers<[1], [1], [0], [0], [0, 0, 1, 0], [], []>} : vector<12x384xf32>, vector<8x384xf32>, vector<12x8xf32> -> vector<12x8xf32>
    %309 = arith.index_cast %300 : i32 to index
    %c0_180 = arith.constant 0 : index
    %c0_181 = arith.constant 0 : index
    %310 = vector.load %arg6[%309, %c0_180, %c0_181] : memref<3x1x8xf32, #tpu.memory_space<vmem>>, vector<1x1x8xf32>
    %311 = vector.shape_cast %310 : vector<1x1x8xf32> to vector<1x8xf32>
    %312 = vector.broadcast %311 : vector<1x8xf32> to vector<12x8xf32>
    %313 = arith.addf %308, %312 : vector<12x8xf32>
    %c0_182 = arith.constant 0 : index
    %c0_183 = arith.constant 0 : index
    %314 = vector.load %arg7[%c0_182, %c0_183] : memref<24x128xf32, #tpu.memory_space<vmem>>, vector<12x8xf32>
    tpu.vector_store %arg7[%c0_182, %c0_183], %313 {strides = array<i32>} : memref<24x128xf32, #tpu.memory_space<vmem>>, vector<12x8xf32>,
    %c1_184 = arith.constant 1 : index
    %315 = memref.load %arg0[%c1_184] : memref<2xi32, #tpu.memory_space<smem>>
    %316 = arith.index_cast %315 : i32 to index
    %c0_185 = arith.constant 0 : index
    %c0_186 = arith.constant 0 : index
    %317 = vector.load %arg5[%316, %c0_185, %c0_186] : memref<3x12x384xf32, #tpu.memory_space<vmem>>, vector<1x12x384xf32>
    %318 = vector.shape_cast %317 : vector<1x12x384xf32> to vector<12x384xf32>
    %c1_187 = arith.constant 1 : index
    %c0_188 = arith.constant 0 : index
    %c0_189 = arith.constant 0 : index
    %319 = vector.load %arg8[%c1_187, %c0_188, %c0_189] : memref<2x8x384xf32, #tpu.memory_space<vmem>>, vector<1x8x384xf32>
    %320 = vector.shape_cast %319 : vector<1x8x384xf32> to vector<8x384xf32>
    %cst_190 = arith.constant 0.000000e+00 : f32
    %321 = vector.broadcast %cst_190 : f32 to vector<8x384xf32>
    %322 = arith.maximumf %320, %321 : vector<8x384xf32>
    %cst_191 = arith.constant dense<0.000000e+00> : vector<12x8xf32>
    %323 = tpu.matmul %318, %322, %cst_191 {dimension_numbers = #tpu.dot_dimension_numbers<[1], [1], [0], [0], [0, 0, 1, 0], [], []>} : vector<12x384xf32>, vector<8x384xf32>, vector<12x8xf32> -> vector<12x8xf32>
    %324 = arith.index_cast %315 : i32 to index
    %c0_192 = arith.constant 0 : index
    %c0_193 = arith.constant 0 : index
    %325 = vector.load %arg6[%324, %c0_192, %c0_193] : memref<3x1x8xf32, #tpu.memory_space<vmem>>, vector<1x1x8xf32>
    %326 = vector.shape_cast %325 : vector<1x1x8xf32> to vector<1x8xf32>
    %327 = vector.broadcast %326 : vector<1x8xf32> to vector<12x8xf32>
    %328 = arith.addf %323, %327 : vector<12x8xf32>
    %c12_194 = arith.constant 12 : index
    %c0_195 = arith.constant 0 : index
    %329 = vector.load %arg7[%c12_194, %c0_195] : memref<24x128xf32, #tpu.memory_space<vmem>>, vector<12x8xf32>
    tpu.vector_store %arg7[%c12_194, %c0_195], %328 {strides = array<i32>} : memref<24x128xf32, #tpu.memory_space<vmem>>, vector<12x8xf32>,
    return
  }
}

</mosaic_0001>

<bundles_post_ra>
// kernel: so3_predictor_forward.1
= control target key start
LH: loop header
LB: loop body
LE: loop exit
PB: predicated region body
PF: predicated region fallthrough
CT: control target
= control target key end

     0   :  { %12 = vsyncpa [#allocation4], 0  ;;  %s1280_s27 = smov [#allocation3]   ;;  %s1844_s0 = inlined_call_operand.vmem [shape: s32[2], index: 0, kind: input, shape index: {}]   ;;  %s1845_s1 = inlined_call_operand.vmem [shape: f32[16,128], index: 1, kind: input, shape index: {}]   ;;  %s1846_s2 = inlined_call_operand.vmem [shape: f32[256,16], index: 2, kind: input, shape index: {}]   ;;  %s1847_s3 = inlined_call_operand.vmem [shape: f32[256,1], index: 3, kind: input, shape index: {}]   ;;  %s1848_s4 = inlined_call_operand.vmem [shape: f32[128,24], index: 4, kind: input, shape index: {}]   ;;  %s1849_s5 = inlined_call_operand.vmem [shape: f32[3,12,384], index: 5, kind: input, shape index: {}]   ;;  %s1850_s6 = inlined_call_operand.vmem [shape: f32[3,1,8], index: 6, kind: input, shape index: {}]   ;;  %s1851_s7 = inlined_call_operand.vmem [shape: f32[24,128], index: 7, kind: output, shape index: {}]  }
   0x1   :  { %s18_s26 = sshll.u32 %s1844_s0, 4  ;;  %s19_s26 = int_to_ptr.vmem [resolvable:$true] %s18_s26 }
   0x2   :  { %21 = dma.vmem_to_smem %s19_s26, 16, %s1280_s27, [#allocation4]  }
   0x3   :  { %1278 = dma.done.wait [#allocation4], 16  }
   0x4   :  { %1279 = vsyncadd [#allocation4], 4294967280 }
   0x5   :  { %38 = sfence }
   0x6   :  { %v72_v0 = vld [vmem:[%s1845_s1 + $0x8] sm:$0xff]  ;;  %v73_v1 = vld [vmem:[%s1847_s3] sm:$0xff]  ;;  %v75_v2 = vld [vmem:[%s1847_s3 + $0x10] sm:$0xff]  ;;  %v1281_v3 = vmov 0   ;;  %vm265_vm0 = vcmask 130048   ;;  %vm636_vm1 = vcmask 97280  }
   0x7   :  { %1261 = vset.pattern.permute.xlu0 %v1281_v3  ;;  %376 = vmatpush.msra.mxu0 %v72_v0  ;;  %v71_v4 = vld [vmem:[%s1845_s1] sm:$0xff]  ;;  %v60_v6 = vld [vmem:[%s1846_s2 + $0xa8] sm:$0xff]  ;;  %v76_v9 = vld [vmem:[%s1847_s3 + $0x18] sm:$0xff]  ;;  %s1283_s15 = smov 12   ;;  %s1284_s1 = smov 24   ;;  %vm648_vm2 = vcmask 195680  }
   0x8   :  { %1193 = vmatpush.msra.mxu3 %v72_v0  ;;  %1262 = vset.pattern.permute.xlu1 %v1281_v3  ;;  %v39_v5 = vld [vmem:[%s1846_s2] sm:$0xff]  ;;  %v74_v8 = vld [vmem:[%s1847_s3 + $0x8] sm:$0xff]  ;;  %v61_v11 = vld [vmem:[%s1846_s2 + $0xb0] sm:$0xff]  ;;  %s1285_s16 = smov 36   ;;  %s1286_s17 = smov 48   ;;  %vm655_vm3 = vcmask 294080  }
   0x9   :  { %107 = vperm.xlu0 %1261, %v73_v1   ;;  %117 = vperm.xlu1 %1262, %v75_v2   ;;  %v77_v7 = vld [vmem:[%s1847_s3 + $0x20] sm:$0xff]  ;;  %v40_v10 = vld [vmem:[%s1846_s2 + $0x8] sm:$0xff]  ;;  %v79_v13 = vld [vmem:[%s1847_s3 + $0x30] sm:$0xff]  ;;  %s1287_s18 = smov 60   ;;  %s1288_s19 = smov 72   ;;  %vm665_vm4 = vcmask 392480  }
   0xa   :  { %377 = vmatpush.msra.mxu0 %v71_v4  ;;  %1194 = vmatpush.msra.mxu3 %v71_v4  ;;  %v78_v12 = vld [vmem:[%s1847_s3 + $0x28] sm:$0xff]  ;;  %v80_v14 = vld [vmem:[%s1847_s3 + $0x38] sm:$0xff]  ;;  %v41_v15 = vld [vmem:[%s1846_s2 + $0x10] sm:$0xff]  ;;  %s1289_s20 = smov 84   ;;  %s1290_s21 = smov 96   ;;  %vm675_vm5 = vcmask 490880  }
   0xb   :  { %1156 = vmatmul.msk.f32.vlgmr.msra.gmra.mxu0 %vm265_vm0, %v39_v5  ;;  %1177 = vmatmul.msk.f32.vlgmr.msra.gmra.mxu3 %vm265_vm0, %v60_v6  ;;  %v62_v16 = vld [vmem:[%s1846_s2 + $0xb8] sm:$0xff]  ;;  %v91_v17 = vld [vmem:[%s1847_s3 + $0x90] sm:$0xff]  ;;  %v81_v18 = vld [vmem:[%s1847_s3 + $0x40] sm:$0xff]  ;;  %s1291_s22 = smov 108   ;;  %s1292_s23 = smov 120   ;;  %vm685_vm6 = vcmask 589280  }
   0xc   :  { %1263 = vset.pattern.permute.xlu2 %v1281_v3  ;;  %v92_v19 = vld [vmem:[%s1847_s3 + $0x98] sm:$0xff]  ;;  %v63_v21 = vld [vmem:[%s1846_s2 + $0xc0] sm:$0xff]  ;;  %v82_v22 = vld [vmem:[%s1847_s3 + $0x48] sm:$0xff]  ;;  %s1293_s24 = smov 104   ;;  %s1294_s25 = smov 4   ;;  %vm695_vm7 = vcmask 687680  }
   0xd   :  { %127 = vperm.xlu2 %1263, %v77_v7   ;;  %v42_v20 = vld [vmem:[%s1846_s2 + $0x18] sm:$0xff]  ;;  %v93_v23 = vld [vmem:[%s1847_s3 + $0xa0] sm:$0xff]  ;;  %v83_v24 = vld [vmem:[%s1847_s3 + $0x50] sm:$0xff]  ;;  %s1295_s26 = smov 16   ;;  %s1296_s27 = smov 28   ;;  %vm705_vm8 = vcmask 786080  }
   0xe   :  { %v43_v25 = vld [vmem:[%s1846_s2 + $0x20] sm:$0xff]  ;;  %v64_v26 = vld [vmem:[%s1846_s2 + $0xc8] sm:$0xff]  ;;  %v84_v28 = vld [vmem:[%s1847_s3 + $0x58] sm:$0xff]  ;;  %s1297_s28 = smov 40   ;;  %s1300_s29 = smov 76   ;;  %vm715_vm9 = vcmask 884480  }
   0xf   :  { %v94_v27 = vld [vmem:[%s1847_s3 + $0xa8] sm:$0xff]  ;;  %v95_v29 = vld [vmem:[%s1847_s3 + $0xb0] sm:$0xff]  ;;  %v85_v32 = vld [vmem:[%s1847_s3 + $0x60] sm:$0xff]  ;;  %s1301_s30 = smov 88   ;;  %s1302_s8 = smov 100   ;;  %vm725_vm10 = vcmask 982880  }
  0x10   :  { %v44_v30 = vld [vmem:[%s1846_s2 + $0x28] sm:$0xff]  ;;  %v65_v31 = vld [vmem:[%s1846_s2 + $0xd0] sm:$0xff]  ;;  %v96_v33 = vld [vmem:[%s1847_s3 + $0xb8] sm:$0xff]  ;;  %s1303_s9 = smov 112   ;;  %s1304_s10 = smov 124   ;;  %vm735_vm11 = vcmask 1048512  }
  0x11   :  { %112 = vperm.xlu0 %1261, %v74_v8   ;;  %122 = vperm.xlu1 %1262, %v76_v9   ;;  %v86_v34 = vld [vmem:[%s1847_s3 + $0x68] sm:$0xff]  ;;  %v45_v35 = vld [vmem:[%s1846_s2 + $0x30] sm:$0xff]  ;;  %v66_v36 = vld [vmem:[%s1846_s2 + $0xd8] sm:$0xff]  ;;  %s1305_s0 = smov 8   ;;  %s1306_s11 = smov 20   ;;  %vm737_vm12 = vcmask 31744  }
  0x12   :  { %v97_v37 = vld [vmem:[%s1847_s3 + $0xc0] sm:$0xff]  ;;  %v87_v38 = vld [vmem:[%s1847_s3 + $0x70] sm:$0xff]  ;;  %v98_v39 = vld [vmem:[%s1847_s3 + $0xc8] sm:$0xff]  ;;  %vm748_vm13 = vcmask 130080   ;;  %s1307_s12 = smov 32   ;;  %vm758_vm14 = vcmask 228480  }
  0x13   :  { %1157 = vmatmul.msk.f32.gmra.mxu0 %vm265_vm0, %v40_v10  ;;  %1178 = vmatmul.msk.f32.gmra.mxu3 %vm265_vm0, %v61_v11  ;;  %v46_v40 = vld [vmem:[%s1846_s2 + $0x38] sm:$0xff]  ;;  %v67_v41 = vld [vmem:[%s1846_s2 + $0xe0] sm:$0xff]  ;;  %v99_v43 = vld [vmem:[%s1847_s3 + $0xd0] sm:$0xff]  ;;  %s1308_s13 = smov 44   ;;  %s1309_s14 = smov 56   ;;  %vm768_vm15 = vcmask 326880  }
  0x14   :  { %v88_v42 = vld [vmem:[%s1847_s3 + $0x78] sm:$0xff]  ;;  %v89_v44 = vld [vmem:[%s1847_s3 + $0x80] sm:$0xff]  ;;  %v68_v46 = vld [vmem:[%s1846_s2 + $0xe8] sm:$0xff] }
  0x15   :  { %132 = vperm.xlu2 %1263, %v78_v12   ;;  %v47_v45 = vld [vmem:[%s1846_s2 + $0x40] sm:$0xff]  ;;  %v100_v47 = vld [vmem:[%s1847_s3 + $0xd8] sm:$0xff]  ;;  %v521_v49 = vld [vmem:[%s1848_s4 + $0x70] sm:$0xff] }
  0x16   :  { %v522_v48 = vld [vmem:[%s1848_s4 + $0x78] sm:$0xff]  ;;  %v520_v50 = vld [vmem:[%s1848_s4 + $0x68] sm:$0xff]  ;;  %v101_v52 = vld [vmem:[%s1847_s3 + $0xe0] sm:$0xff] }
  0x17   :  { %523 = vmatpush.msra.mxu1 %v522_v48  ;;  %1196 = vmatpush.msrb.mxu3 %v522_v48  ;;  %v90_v51 = vld [vmem:[%s1847_s3 + $0x88] sm:$0xff]  ;;  %v69_v54 = vld [vmem:[%s1846_s2 + $0xf0] sm:$0xff]  ;;  %v519_v55 = vld [vmem:[%s1848_s4 + $0x60] sm:$0xff] }
  0x18   :  { %1195 = vmatpush.msra.mxu2 %v522_v48  ;;  %v48_v53 = vld [vmem:[%s1846_s2 + $0x48] sm:$0xff]  ;;  %v103_v56 = vld [vmem:[%s1847_s3 + $0xf0] sm:$0xff]  ;;  %v518_v57 = vld [vmem:[%s1848_s4 + $0x58] sm:$0xff] }
  0x19   :  { %137 = vperm.xlu0 %1261, %v79_v13   ;;  %142 = vperm.xlu1 %1262, %v80_v14   ;;  %v517_v58 = vld [vmem:[%s1848_s4 + $0x50] sm:$0xff]  ;;  %v102_v59 = vld [vmem:[%s1847_s3 + $0xe8] sm:$0xff]  ;;  %v104_v60 = vld [vmem:[%s1847_s3 + $0xf8] sm:$0xff]  ;;  %s1299_s3 = smov 64  }
  0x1a   :  { %524 = vmatpush.msra.mxu1 %v521_v49  ;;  %1198 = vmatpush.msrb.mxu3 %v521_v49  ;;  %v516_v61 = vld [vmem:[%s1848_s4 + $0x48] sm:$0xff]  ;;  %v49_v62 = vld [vmem:[%s1846_s2 + $0x50] sm:$0xff]  ;;  %v70_v63 = vld [vmem:[%s1846_s2 + $0xf8] sm:$0xff] }
  0x1b   :  { %1158 = vmatmul.msk.f32.gmra.mxu0 %vm265_vm0, %v41_v15  ;;  %1179 = vmatmul.msk.f32.gmra.mxu3 %vm265_vm0, %v62_v16  ;;  %v515_v0 = vld [vmem:[%s1848_s4 + $0x40] sm:$0xff]  ;;  %v514_v1 = vld [vmem:[%s1848_s4 + $0x38] sm:$0xff]  ;;  %v513_v2 = vld [vmem:[%s1848_s4 + $0x30] sm:$0xff] }
  0x1c   :  { %1197 = vmatpush.msra.mxu2 %v521_v49  ;;  %525 = vmatpush.msra.mxu1 %v520_v50  ;;  %v512_v3 = vld [vmem:[%s1848_s4 + $0x28] sm:$0xff]  ;;  %v50_v4 = vld [vmem:[%s1846_s2 + $0x58] sm:$0xff]  ;;  %v511_v5 = vld [vmem:[%s1848_s4 + $0x20] sm:$0xff] }
  0x1d   :  { %197 = vperm.xlu2 %1263, %v91_v17   ;;  %1200 = vmatpush.msrb.mxu3 %v520_v50  ;;  %v510_v6 = vld [vmem:[%s1848_s4 + $0x18] sm:$0xff]  ;;  %v509_v7 = vld [vmem:[%s1848_s4 + $0x10] sm:$0xff]  ;;  %v51_v8 = vld [vmem:[%s1846_s2 + $0x60] sm:$0xff] }
  0x1e   :  { %1199 = vmatpush.msra.mxu2 %v520_v50  ;;  %526 = vmatpush.msra.mxu1 %v519_v55  ;;  %v508_v10 = vld [vmem:[%s1848_s4 + $0x8] sm:$0xff]  ;;  %v507_v11 = vld [vmem:[%s1848_s4] sm:$0xff]  ;;  %v53_v14 = vld [vmem:[%s1846_s2 + $0x70] sm:$0xff]  ;;  %s1298_s4 = smov 52  }
  0x1f   :  { %1202 = vmatpush.msrb.mxu3 %v519_v55  ;;  %v52_v12 = vld [vmem:[%s1846_s2 + $0x68] sm:$0xff] }
  0x20   :  { %1201 = vmatpush.msra.mxu2 %v519_v55  ;;  %527 = vmatpush.msra.mxu1 %v518_v57 }
  0x21   :  { %147 = vperm.xlu0 %1261, %v81_v18   ;;  %202 = vperm.xlu1 %1262, %v92_v19   ;;  %v54_v18 = vld [vmem:[%s1846_s2 + $0x78] sm:$0xff] }
  0x22   :  { %1204 = vmatpush.msrb.mxu3 %v518_v57  ;;  %1203 = vmatpush.msra.mxu2 %v518_v57  ;;  %v59_v57 = vld [vmem:[%s1846_s2 + $0xa0] sm:$0xff] }
  0x23   :  { %1159 = vmatmul.msk.f32.gmra.mxu0 %vm265_vm0, %v42_v20  ;;  %1180 = vmatmul.msk.f32.gmra.mxu3 %vm265_vm0, %v63_v21 }
  0x24   :  { %528 = vmatpush.msra.mxu1 %v517_v58  ;;  %1206 = vmatpush.msrb.mxu3 %v517_v58 }
  0x25   :  { %152 = vperm.xlu2 %1263, %v82_v22   ;;  %1205 = vmatpush.msra.mxu2 %v517_v58 }
  0x26   :  { %529 = vmatpush.msra.mxu1 %v516_v61  ;;  %1208 = vmatpush.msrb.mxu3 %v516_v61 }
  0x27   :  { %1207 = vmatpush.msra.mxu2 %v516_v61 }
  0x28   :  { %530 = vmatpush.msra.mxu1 %v515_v0  ;;  %1210 = vmatpush.msrb.mxu3 %v515_v0 }
  0x29   :  { %207 = vperm.xlu0 %1261, %v93_v23   ;;  %157 = vperm.xlu1 %1262, %v83_v24   ;;  %v55_v23 = vld [vmem:[%s1846_s2 + $0x80] sm:$0xff] }
  0x2a   :  { %531 = vmatpush.msra.mxu1 %v514_v1  ;;  %1212 = vmatpush.msrb.mxu3 %v514_v1 }
  0x2b   :  { %1160 = vmatmul.msk.f32.gmra.mxu0 %vm265_vm0, %v43_v25  ;;  %1181 = vmatmul.msk.f32.gmra.mxu3 %vm265_vm0, %v64_v26 }
  0x2c   :  { %532 = vmatpush.msra.mxu1 %v513_v2  ;;  %1209 = vmatpush.msra.mxu2 %v515_v0 }
  0x2d   :  { %212 = vperm.xlu2 %1263, %v94_v27   ;;  %1214 = vmatpush.msrb.mxu3 %v513_v2 }
  0x2e   :  { %533 = vmatpush.msra.mxu1 %v512_v3  ;;  %1211 = vmatpush.msra.mxu2 %v514_v1 }
  0x2f   :  { %1216 = vmatpush.msrb.mxu3 %v512_v3 }
  0x30   :  { %534 = vmatpush.msra.mxu1 %v511_v5  ;;  %1213 = vmatpush.msra.mxu2 %v513_v2 }
  0x31   :  { %162 = vperm.xlu0 %1261, %v84_v28   ;;  %217 = vperm.xlu1 %1262, %v95_v29  }
  0x32   :  { %535 = vmatpush.msra.mxu1 %v510_v6  ;;  %1218 = vmatpush.msrb.mxu3 %v511_v5 }
  0x33   :  { %1161 = vmatmul.msk.f32.gmra.mxu0 %vm265_vm0, %v44_v30  ;;  %1182 = vmatmul.msk.f32.gmra.mxu3 %vm265_vm0, %v65_v31 }
  0x34   :  { %1215 = vmatpush.msra.mxu2 %v512_v3  ;;  %536 = vmatpush.msra.mxu1 %v509_v7 }
  0x35   :  { %167 = vperm.xlu2 %1263, %v85_v32   ;;  %1220 = vmatpush.msrb.mxu3 %v510_v6  ;;  %v56_v32 = vld [vmem:[%s1846_s2 + $0x88] sm:$0xff] }
  0x36   :  { %1217 = vmatpush.msra.mxu2 %v511_v5  ;;  %537 = vmatpush.msra.mxu1 %v508_v10 }
  0x37   :  { %1222 = vmatpush.msrb.mxu3 %v509_v7 }
  0x38   :  { %1219 = vmatpush.msra.mxu2 %v510_v6  ;;  %538 = vmatpush.msra.mxu1 %v507_v11 }
  0x39   :  { %222 = vperm.xlu0 %1261, %v96_v33   ;;  %172 = vperm.xlu1 %1262, %v86_v34  }
  0x3a   :  { %1224 = vmatpush.msrb.mxu3 %v508_v10  ;;  %1221 = vmatpush.msra.mxu2 %v509_v7 }
  0x3b   :  { %1162 = vmatmul.msk.f32.gmra.mxu0 %vm265_vm0, %v45_v35  ;;  %1183 = vmatmul.msk.f32.gmra.mxu3 %vm265_vm0, %v66_v36 }
  0x3c   :  { %1226 = vmatpush.msrb.mxu3 %v507_v11  ;;  %1223 = vmatpush.msra.mxu2 %v508_v10 }
  0x3d   :  { %227 = vperm.xlu2 %1263, %v97_v37  }
  0x3e   :  { %1225 = vmatpush.msra.mxu2 %v507_v11 }
  0x41   :  { %177 = vperm.xlu0 %1261, %v87_v38   ;;  %232 = vperm.xlu1 %1262, %v98_v39   ;;  %v57_v39 = vld [vmem:[%s1846_s2 + $0x90] sm:$0xff] }
  0x43   :  { %1163 = vmatmul.msk.f32.gmra.mxu0 %vm265_vm0, %v46_v40  ;;  %1184 = vmatmul.msk.f32.gmra.mxu3 %vm265_vm0, %v67_v41 }
  0x45   :  { %182 = vperm.xlu2 %1263, %v88_v42  }
  0x49   :  { %237 = vperm.xlu0 %1261, %v99_v43   ;;  %187 = vperm.xlu1 %1262, %v89_v44  }
  0x4b   :  { %1164 = vmatmul.msk.f32.gmra.mxu0 %vm265_vm0, %v47_v45  ;;  %1185 = vmatmul.msk.f32.gmra.mxu3 %vm265_vm0, %v68_v46 }
  0x4d   :  { %242 = vperm.xlu2 %1263, %v100_v47   ;;  %v58_v47 = vld [vmem:[%s1846_s2 + $0x98] sm:$0xff]  ;;  %s1282_s2 = smov 116  }
  0x51   :  { %192 = vperm.xlu0 %1261, %v90_v51   ;;  %247 = vperm.xlu1 %1262, %v101_v52  }
  0x53   :  { %1165 = vmatmul.msk.f32.gmra.mxu0 %vm265_vm0, %v48_v53  ;;  %1186 = vmatmul.msk.f32.gmra.mxu3 %vm265_vm0, %v69_v54 }
  0x55   :  { %257 = vperm.xlu2 %1263, %v103_v56  }
  0x59   :  { %252 = vperm.xlu0 %1261, %v102_v59   ;;  %262 = vperm.xlu1 %1262, %v104_v60  }
  0x5b   :  { %1166 = vmatmul.msk.f32.gmra.mxu0 %vm265_vm0, %v49_v62  ;;  %1187 = vmatmul.msk.f32.gmra.mxu3 %vm265_vm0, %v70_v63 }
  0x63   :  { %1167 = vmatmul.msk.f32.gmra.mxu0 %vm265_vm0, %v50_v4 }
  0x67   :  { %v1596_v9 = vpop.permute.xlu2 %127 }
  0x6b   :  { %1168 = vmatmul.msk.f32.gmra.mxu0 %vm265_vm0, %v51_v8 }
  0x6f   :  { %v1608_v13 = vpop.permute.xlu2 %132 }
  0x73   :  { %1169 = vmatmul.msk.f32.gmra.mxu0 %vm265_vm0, %v52_v12 }
  0x77   :  { %v1614_v15 = vpop.permute.xlu2 %197 }
  0x7b   :  { %v108_v16 = vpop.permute.xlu0 %107  ;;  %1170 = vmatmul.msk.f32.gmra.mxu0 %vm265_vm0, %v53_v14  ;;  %v118_v17 = vpop.permute.xlu1 %117 }
  0x7f   :  { %v1621_v21 = vpop.permute.xlu2 %152 }
  0x83   :  { %v113_v19 = vpop.permute.xlu0 %112  ;;  %1171 = vmatmul.msk.f32.gmra.mxu0 %vm265_vm0, %v54_v18  ;;  %v123_v20 = vpop.permute.xlu1 %122 }
  0x87   :  { %v213_v29 = vpop.permute.xlu2 %212 }
  0x88   :  { %v379_v22 = vpop.f32.mrf.mxu0 }
  0x89   :  { %v380_v24 = vadd.f32 %v379_v22, %v108_v16 }
  0x8b   :  { %v475_v25 = vmax.f32 %v380_v24, 0.0  ;;  %v138_v26 = vpop.permute.xlu0 %137  ;;  %1172 = vmatmul.msk.f32.gmra.mxu0 %vm265_vm0, %v55_v23  ;;  %v1627_v27 = vpop.permute.xlu1 %142 }
  0x8d   :  { %539 = vmatmul.f32.vlgmr.msra.gmra.mxu1 %v475_v25 }
  0x8e   :  { %v442_v28 = vpop.f32.mrf.mxu3 }
  0x8f   :  { %v1629_v30 = vadd.f32 %v442_v28, %v213_v29  ;;  %v1647_v44 = vpop.permute.xlu2 %167 }
  0x90   :  { %v382_v31 = vpop.f32.mrf.mxu0 }
  0x91   :  { %v383_v33 = vadd.f32 %v382_v31, %v113_v19 }
  0x93   :  { %v476_v34 = vmax.f32 %v383_v33, 0.0  ;;  %v1634_v35 = vpop.permute.xlu0 %147  ;;  %1173 = vmatmul.msk.f32.gmra.mxu0 %vm265_vm0, %v56_v32  ;;  %v1637_v36 = vpop.permute.xlu1 %202 }
  0x95   :  { %542 = vmatmul.f32.gmra.mxu1 %v476_v34 }
  0x96   :  { %v445_v37 = vpop.f32.mrf.mxu3 }
  0x97   :  { %v228_v54 = vpop.permute.xlu2 %227 }
  0x98   :  { %v385_v38 = vpop.f32.mrf.mxu0 }
  0x99   :  { %v386_v40 = vadd.f32 %v385_v38, %v118_v17 }
  0x9b   :  { %v477_v41 = vmax.f32 %v386_v40, 0.0  ;;  %v1642_v42 = vpop.permute.xlu0 %207  ;;  %1174 = vmatmul.msk.f32.gmra.mxu0 %vm265_vm0, %v57_v39  ;;  %v1645_v43 = vpop.permute.xlu1 %157 }
  0x9d   :  { %545 = vmatmul.f32.gmra.mxu1 %v477_v41 }
  0x9e   :  { %v448_v45 = vpop.f32.mrf.mxu3 }
  0x9f   :  { %v183_v6 = vpop.permute.xlu2 %182 }
  0xa0   :  { %v388_v46 = vpop.f32.mrf.mxu0 }
  0xa1   :  { %v389_v48 = vadd.f32 %v388_v46, %v123_v20 }
  0xa3   :  { %v478_v49 = vmax.f32 %v389_v48, 0.0  ;;  %v1652_v50 = vpop.permute.xlu0 %162  ;;  %1175 = vmatmul.msk.f32.gmra.mxu0 %vm265_vm0, %v58_v47  ;;  %v218_v51 = vpop.permute.xlu1 %217 }
  0xa4   :  { %v1655_v52 = vadd.f32 %v445_v37, %v218_v51 }
  0xa5   :  { %548 = vmatmul.f32.gmra.mxu1 %v478_v49 }
  0xa6   :  { %v451_v53 = vpop.f32.mrf.mxu3 }
  0xa7   :  { %v1657_v55 = vadd.f32 %v451_v53, %v228_v54  ;;  %v243_v17 = vpop.permute.xlu2 %242 }
  0xa8   :  { %v391_v56 = vpop.f32.mrf.mxu0 }
  0xa9   :  { %v392_v58 = vadd.f32 %v391_v56, %v1596_v9 }
  0xab   :  { %v479_v59 = vmax.f32 %v392_v58, 0.0  ;;  %v223_v60 = vpop.permute.xlu0 %222  ;;  %1176 = vmatmul.msk.f32.gmra.mxu0 %vm265_vm0, %v59_v57  ;;  %v173_v61 = vpop.permute.xlu1 %172  ;;  %vm778_vm0 = vcmask 425280  }
  0xac   :  { %v1664_v62 = vadd.f32 %v448_v45, %v223_v60 }
  0xad   :  { %551 = vmatmul.f32.gmra.mxu1 %v479_v59 }
  0xae   :  { %v454_v63 = vpop.f32.mrf.mxu3 }
  0xaf   :  { %v258_v34 = vpop.permute.xlu2 %257 }
  0xb0   :  { %v394_v0 = vpop.f32.mrf.mxu0 }
  0xb1   :  { %v395_v1 = vadd.f32 %v394_v0, %v1608_v13 }
  0xb3   :  { %v480_v2 = vmax.f32 %v395_v1, 0.0  ;;  %v178_v3 = vpop.permute.xlu0 %177  ;;  %v233_v4 = vpop.permute.xlu1 %232 }
  0xb4   :  { %v1667_v5 = vadd.f32 %v454_v63, %v233_v4 }
  0xb5   :  { %554 = vmatmul.f32.gmra.mxu1 %v480_v2 }
  0xb6   :  { %v457_v7 = vpop.f32.mrf.mxu3 }
  0xb8   :  { %v397_v8 = vpop.f32.mrf.mxu0 }
  0xb9   :  { %v398_v9 = vadd.f32 %v397_v8, %v138_v26 }
  0xbb   :  { %v481_v10 = vmax.f32 %v398_v9, 0.0  ;;  %v238_v11 = vpop.permute.xlu0 %237  ;;  %v188_v14 = vpop.permute.xlu1 %187 }
  0xbc   :  { %v1669_v12 = vadd.f32 %v457_v7, %v238_v11 }
  0xbd   :  { %557 = vmatmul.f32.gmra.mxu1 %v481_v10 }
  0xbe   :  { %v460_v16 = vpop.f32.mrf.mxu3 }
  0xbf   :  { %v1671_v18 = vadd.f32 %v460_v16, %v243_v17 }
  0xc0   :  { %v400_v13 = vpop.f32.mrf.mxu0 }
  0xc1   :  { %v401_v19 = vadd.f32 %v400_v13, %v1627_v27 }
  0xc3   :  { %v482_v20 = vmax.f32 %v401_v19, 0.0  ;;  %v248_v22 = vpop.permute.xlu1 %247 }
  0xc5   :  { %560 = vmatmul.f32.gmra.mxu1 %v482_v20 }
  0xc6   :  { %v463_v23 = vpop.f32.mrf.mxu3 }
  0xc7   :  { %v1674_v24 = vadd.f32 %v463_v23, %v248_v22 }
  0xc8   :  { %v403_v25 = vpop.f32.mrf.mxu0 }
  0xc9   :  { %v404_v26 = vadd.f32 %v403_v25, %v1634_v35 }
  0xcb   :  { %v483_v28 = vmax.f32 %v404_v26, 0.0  ;;  %v263_v35 = vpop.permute.xlu1 %262  ;;  %v496_v26 = vmax.f32 %v1629_v30, 0.0  ;;  %v499_v30 = vmax.f32 %v1657_v55, 0.0 }
  0xcd   :  { %563 = vmatmul.f32.gmra.mxu1 %v483_v28  ;;  %v497_v28 = vmax.f32 %v1655_v52, 0.0  ;;  %v500_v52 = vmax.f32 %v1667_v5, 0.0 }
  0xce   :  { %v1677_v29 = vpop.f32.mrf.mxu3 }
  0xd0   :  { %v406_v31 = vpop.f32.mrf.mxu0 }
  0xd1   :  { %v407_v32 = vadd.f32 %v406_v31, %v1621_v21  ;;  %v498_v31 = vmax.f32 %v1664_v62, 0.0  ;;  %v501_v62 = vmax.f32 %v1669_v12, 0.0 }
  0xd3   :  { %v484_v33 = vmax.f32 %v407_v32, 0.0 }
  0xd5   :  { %566 = vmatmul.f32.gmra.mxu1 %v484_v33 }
  0xd6   :  { %v469_v27 = vpop.f32.mrf.mxu3 }
  0xd7   :  { %v470_v37 = vadd.f32 %v469_v27, %v258_v34 }
  0xd8   :  { %v409_v38 = vpop.f32.mrf.mxu0 }
  0xd9   :  { %v505_v39 = vmax.f32 %v470_v37, 0.0  ;;  %v410_v40 = vadd.f32 %v409_v38, %v1645_v43  ;;  %v502_v37 = vmax.f32 %v1671_v18, 0.0  ;;  %v503_v38 = vmax.f32 %v1674_v24, 0.0 }
  0xdb   :  { %v485_v41 = vmax.f32 %v410_v40, 0.0  ;;  %629 = vmatmul.f32.vlgmr.msrb.gmra.mxu3 %v505_v39 }
  0xdd   :  { %569 = vmatmul.f32.gmra.mxu1 %v485_v41 }
  0xde   :  { %v472_v45 = vpop.f32.mrf.mxu3 }
  0xdf   :  { %v473_v46 = vadd.f32 %v472_v45, %v263_v35 }
  0xe0   :  { %v412_v47 = vpop.f32.mrf.mxu0 }
  0xe1   :  { %v506_v48 = vmax.f32 %v473_v46, 0.0  ;;  %v413_v49 = vadd.f32 %v412_v47, %v1652_v50 }
  0xe3   :  { %v486_v21 = vmax.f32 %v413_v49, 0.0  ;;  %632 = vmatmul.f32.gmra.mxu3 %v506_v48 }
  0xe5   :  { %572 = vmatmul.f32.gmra.mxu1 %v486_v21 }
  0xe8   :  { %v415_v51 = vpop.f32.mrf.mxu0 }
  0xe9   :  { %v416_v53 = vadd.f32 %v415_v51, %v1647_v44  ;;  %v193_v44 = vpop.permute.xlu0 %192 }
  0xeb   :  { %v487_v54 = vmax.f32 %v416_v53, 0.0 }
  0xed   :  { %575 = vmatmul.f32.gmra.mxu1 %v487_v54 }
  0xf0   :  { %v418_v56 = vpop.f32.mrf.mxu0 }
  0xf1   :  { %v419_v43 = vadd.f32 %v418_v56, %v173_v61  ;;  %v253_v40 = vpop.permute.xlu0 %252 }
  0xf2   :  { %v467_v18 = vadd.f32 %v1677_v29, %v253_v40 }
  0xf3   :  { %v488_v57 = vmax.f32 %v419_v43, 0.0 }
  0xf4   :  { %v504_v35 = vmax.f32 %v467_v18, 0.0 }
  0xf5   :  { %578 = vmatmul.f32.gmra.mxu1 %v488_v57 }
  0xf8   :  { %v421_v58 = vpop.f32.mrf.mxu0 }
  0xf9   :  { %v422_v59 = vadd.f32 %v421_v58, %v178_v3 }
  0xfb   :  { %v489_v60 = vmax.f32 %v422_v59, 0.0 }
  0xfd   :  { %581 = vmatmul.f32.gmra.mxu1 %v489_v60 }
 0x100   :  { %v424_v63 = vpop.f32.mrf.mxu0 }
 0x101   :  { %v425_v0 = vadd.f32 %v424_v63, %v183_v6 }
 0x103   :  { %v490_v1 = vmax.f32 %v425_v0, 0.0 }
 0x105   :  { %584 = vmatmul.f32.gmra.mxu1 %v490_v1 }
 0x108   :  { %v427_v50 = vpop.f32.mrf.mxu0 }
 0x109   :  { %v428_v2 = vadd.f32 %v427_v50, %v188_v14 }
 0x10a   :  { %v540_v4 = vpop.f32.mrf.mxu1 }
 0x10b   :  { %v491_v7 = vmax.f32 %v428_v2, 0.0  ;;  %639 = vrot.lane.b32.xlu0 %v540_v4, %s1282_s2  ;;  %637 = vst.msk [vmem:[#allocation2] sm:$0xff] %vm636_vm1, %v540_v4 }
 0x10d   :  { %587 = vmatmul.f32.gmra.mxu1 %v491_v7 }
 0x110   :  { %v430_v61 = vpop.f32.mrf.mxu0 }
 0x111   :  { %v431_v3 = vadd.f32 %v430_v61, %v193_v44 }
 0x112   :  { %v1685_v8 = vpop.f32.mrf.mxu1 }
 0x113   :  { %v492_v9 = vmax.f32 %v431_v3, 0.0  ;;  %645 = vrot.lane.b32.xlu2 %v1685_v8, %s1283_s15 }
 0x115   :  { %590 = vmatmul.f32.gmra.mxu1 %v492_v9 }
 0x118   :  { %v433_v6 = vpop.f32.mrf.mxu0 }
 0x119   :  { %v434_v10 = vadd.f32 %v433_v6, %v1614_v15 }
 0x11a   :  { %v546_v11 = vpop.f32.mrf.mxu1 }
 0x11b   :  { %v493_v14 = vmax.f32 %v434_v10, 0.0  ;;  %657 = vrot.lane.b32.xlu0 %v546_v11, %s1283_s15  ;;  %652 = vrot.lane.b32.xlu1 %v546_v11, %s1284_s1  ;;  %s1311_s15 = smov 80  }
 0x11d   :  { %593 = vmatmul.f32.vlgmr.msra.gmra.mxu2 %v493_v14 }
 0x120   :  { %v436_v16 = vpop.f32.mrf.mxu0 }
 0x121   :  { %v437_v17 = vadd.f32 %v436_v16, %v1637_v36 }
 0x122   :  { %v549_v13 = vpop.f32.mrf.mxu1 }
 0x123   :  { %v494_v19 = vmax.f32 %v437_v17, 0.0  ;;  %667 = vrot.lane.b32.xlu2 %v549_v13, %s1284_s1  ;;  %662 = vrot.lane.b32.xlu0 %v549_v13, %s1285_s16  ;;  %s1312_s1 = smov 92  }
 0x125   :  { %596 = vmatmul.f32.gmra.mxu2 %v494_v19 }
 0x128   :  { %v439_v20 = vpop.f32.mrf.mxu0 }
 0x129   :  { %v440_v22 = vadd.f32 %v439_v20, %v1642_v42 }
 0x12a   :  { %v552_v23 = vpop.f32.mrf.mxu1 }
 0x12b   :  { %v495_v15 = vmax.f32 %v440_v22, 0.0  ;;  %677 = vrot.lane.b32.xlu1 %v552_v23, %s1285_s16  ;;  %672 = vrot.lane.b32.xlu2 %v552_v23, %s1286_s17  ;;  %s1747_s16 = sld [smem:[#allocation3]] }
 0x12d   :  { %599 = vmatmul.f32.gmra.mxu2 %v495_v15 }
 0x132   :  { %v555_v25 = vpop.f32.mrf.mxu1 }
 0x133   :  { %687 = vrot.lane.b32.xlu0 %v555_v25, %s1286_s17  ;;  %682 = vrot.lane.b32.xlu1 %v555_v25, %s1287_s18 }
 0x135   :  { %602 = vmatmul.f32.gmra.mxu2 %v496_v26 }
 0x13a   :  { %v558_v36 = vpop.f32.mrf.mxu1 }
 0x13b   :  { %697 = vrot.lane.b32.xlu2 %v558_v36, %s1287_s18  ;;  %692 = vrot.lane.b32.xlu0 %v558_v36, %s1288_s19 }
 0x13d   :  { %605 = vmatmul.f32.gmra.mxu2 %v497_v28 }
 0x142   :  { %v561_v42 = vpop.f32.mrf.mxu1 }
 0x143   :  { %707 = vrot.lane.b32.xlu1 %v561_v42, %s1288_s19  ;;  %702 = vrot.lane.b32.xlu2 %v561_v42, %s1289_s20  ;;  %s976_s19 = scalar_lea.vmem %s1850_s6, %s1747_s16 }
 0x145   :  { %608 = vmatmul.f32.gmra.mxu2 %v498_v31 }
 0x14a   :  { %v564_v32 = vpop.f32.mrf.mxu1 }
 0x14b   :  { %717 = vrot.lane.b32.xlu0 %v564_v32, %s1289_s20  ;;  %712 = vrot.lane.b32.xlu1 %v564_v32, %s1290_s21  ;;  %s1191_s20 = smul.u32 48, %s1747_s16 }
 0x14d   :  { %611 = vmatmul.f32.gmra.mxu2 %v499_v30 }
 0x152   :  { %v567_v33 = vpop.f32.mrf.mxu1 }
 0x153   :  { %727 = vrot.lane.b32.xlu2 %v567_v33, %s1290_s21  ;;  %722 = vrot.lane.b32.xlu0 %v567_v33, %s1291_s22 }
 0x155   :  { %614 = vmatmul.f32.gmra.mxu2 %v500_v52 }
 0x15a   :  { %v570_v34 = vpop.f32.mrf.mxu1 }
 0x15b   :  { %732 = vrot.lane.b32.xlu0 %v570_v34, %s1292_s23 }
 0x15d   :  { %617 = vmatmul.f32.gmra.mxu2 %v501_v62 }
 0x15e   :  { %v1697_v27 = vpop.f32.mrf.mxu3 }
 0x15f   :  { %938 = vrot.lane.b32.xlu2 %v1697_v27, %s1293_s24 }
 0x162   :  { %v573_v55 = vpop.f32.mrf.mxu1 }
 0x163   :  { %739 = vrot.lane.b32.xlu0 %v570_v34, %s1291_s22  ;;  %750 = vrot.lane.b32.xlu1 %v573_v55, %s1292_s23  ;;  %s1766_s23 = scalar_lea.vmem %s1849_s5, %s1191_s20 }
 0x165   :  { %620 = vmatmul.f32.gmra.mxu2 %v502_v37 }
 0x166   :  { %v1702_v5 = vpop.f32.mrf.mxu3 }
 0x167   :  { %745 = vrot.lane.b32.xlu2 %v573_v55, %s1294_s25 }
 0x16a   :  { %v576_v12 = vpop.f32.mrf.mxu1 }
 0x16b   :  { %948 = vrot.lane.b32.xlu1 %v1702_v5, %s1282_s2  ;;  %s1310_s2 = smov 68  }
 0x16d   :  { %623 = vmatmul.f32.gmra.mxu2 %v503_v38  ;;  %v646_v39 = vpop.permute.xlu2 %645 }
 0x16e   :  { %649 = vst.msk [vmem:[#allocation2] sm:$0xff] %vm648_vm2, %v646_v39 }
 0x16f   :  { %760 = vrot.lane.b32.xlu2 %v576_v12, %s1294_s25 }
 0x172   :  { %v579_v41 = vpop.f32.mrf.mxu1 }
 0x173   :  { %755 = vrot.lane.b32.xlu1 %v576_v12, %s1295_s26  ;;  %765 = vrot.lane.b32.xlu0 %v579_v41, %s1296_s27 }
 0x175   :  { %626 = vmatmul.f32.gmra.mxu2 %v504_v35 }
 0x17a   :  { %v582_v24 = vpop.f32.mrf.mxu1 }
 0x17b   :  { %770 = vrot.lane.b32.xlu0 %v579_v41, %s1295_s26  ;;  %775 = vrot.lane.b32.xlu2 %v582_v24, %s1297_s28 }
 0x17d   :  { %v640_v45 = vpop.permute.xlu0 %639  ;;  %v668_v47 = vpop.permute.xlu2 %667 }
 0x17e   :  { %643 = vst.msk [vmem:[#allocation2 + $0x18] sm:$0xff] %vm636_vm1, %v640_v45  ;;  %vm788_vm1 = vcmask 523680  }
 0x17f   :  { %650 = vst.msk [vmem:[#allocation2 + $0x18] sm:$0xff] %vm648_vm2, %v1685_v8  ;;  %vm798_vm2 = vcmask 622080  }
 0x182   :  { %v585_v46 = vpop.f32.mrf.mxu1 }
 0x183   :  { %780 = vrot.lane.b32.xlu2 %v582_v24, %s1296_s27  ;;  %785 = vrot.lane.b32.xlu1 %v585_v46, %s1298_s4 }
 0x185   :  { %v673_v53 = vpop.permute.xlu2 %672 }
 0x18a   :  { %v588_v29 = vpop.f32.mrf.mxu1 }
 0x18b   :  { %790 = vrot.lane.b32.xlu1 %v585_v46, %s1297_s28  ;;  %795 = vrot.lane.b32.xlu0 %v588_v29, %s1299_s3 }
 0x18d   :  { %v658_v48 = vpop.permute.xlu0 %657  ;;  %v653_v49 = vpop.permute.xlu1 %652 }
 0x18e   :  { %660 = vst.msk [vmem:[#allocation2 + $0x18] sm:$0xff] %vm655_vm3, %v658_v48 }
 0x18f   :  { %656 = vst.msk [vmem:[#allocation2] sm:$0xff] %vm655_vm3, %v653_v49  ;;  %vm808_vm3 = vcmask 720480  }
 0x190   :  { %670 = vst.msk [vmem:[#allocation2 + $0x18] sm:$0xff] %vm665_vm4, %v668_v47 }
 0x192   :  { %v591_v21 = vpop.f32.mrf.mxu1 }
 0x193   :  { %800 = vrot.lane.b32.xlu0 %v588_v29, %s1298_s4  ;;  %805 = vrot.lane.b32.xlu2 %v591_v21, %s1300_s29 }
 0x195   :  { %v663_v51 = vpop.permute.xlu0 %662  ;;  %v698_v43 = vpop.permute.xlu2 %697 }
 0x196   :  { %666 = vst.msk [vmem:[#allocation2] sm:$0xff] %vm665_vm4, %v663_v51  ;;  %vm818_vm4 = vcmask 818880  }
 0x197   :  { %676 = vst.msk [vmem:[#allocation2] sm:$0xff] %vm675_vm5, %v673_v53  ;;  %v965_v53 = vld [vmem:[%s1766_s23 + $0x8] sm:$0xff] }
 0x19b   :  { %810 = vrot.lane.b32.xlu2 %v591_v21, %s1299_s3  ;;  %v964_v21 = vld [vmem:[%s1766_s23] sm:$0xff] }
 0x19d   :  { %v678_v54 = vpop.permute.xlu1 %677  ;;  %v703_v63 = vpop.permute.xlu2 %702 }
 0x19e   :  { %680 = vst.msk [vmem:[#allocation2 + $0x18] sm:$0xff] %vm675_vm5, %v678_v54  ;;  %vm828_vm5 = vcmask 917280  }
 0x1a0   :  { %v1713_v56 = vpop.f32.mrf.mxu2 }
 0x1a1   :  { %815 = vrot.lane.b32.xlu1 %v1713_v56, %s1301_s30 }
 0x1a5   :  { %v688_v57 = vpop.permute.xlu0 %687  ;;  %v683_v58 = vpop.permute.xlu1 %682 }
 0x1a6   :  { %690 = vst.msk [vmem:[#allocation2 + $0x18] sm:$0xff] %vm685_vm6, %v688_v57 }
 0x1a7   :  { %686 = vst.msk [vmem:[#allocation2] sm:$0xff] %vm685_vm6, %v683_v58  ;;  %vm838_vm6 = vcmask 1015680  }
 0x1a8   :  { %v1717_v59 = vpop.f32.mrf.mxu2  ;;  %700 = vst.msk [vmem:[#allocation2 + $0x18] sm:$0xff] %vm695_vm7, %v698_v43  ;;  %v968_v43 = vld [vmem:[%s1766_s23 + $0x20] sm:$0xf] }
 0x1a9   :  { %825 = vrot.lane.b32.xlu2 %v1717_v59, %s1302_s8 }
 0x1ad   :  { %v693_v60 = vpop.permute.xlu0 %692  ;;  %v728_v2 = vpop.permute.xlu2 %727 }
 0x1ae   :  { %696 = vst.msk [vmem:[#allocation2] sm:$0xff] %vm695_vm7, %v693_v60  ;;  %vm848_vm7 = vcmask 1048544  }
 0x1af   :  { %706 = vst.msk [vmem:[#allocation2] sm:$0xff] %vm705_vm8, %v703_v63 }
 0x1b0   :  { %v1721_v0 = vpop.f32.mrf.mxu2 }
 0x1b1   :  { %835 = vrot.lane.b32.xlu0 %v1721_v0, %s1303_s9 }
 0x1b5   :  { %v708_v1 = vpop.permute.xlu1 %707 }
 0x1b6   :  { %710 = vst.msk [vmem:[#allocation2 + $0x18] sm:$0xff] %vm705_vm8, %v708_v1  ;;  %vm850_vm8 = vcmask 64512  }
 0x1b8   :  { %v603_v50 = vpop.f32.mrf.mxu2 }
 0x1b9   :  { %845 = vrot.lane.b32.xlu1 %v603_v50, %s1304_s10  ;;  %v1724_v61 = vpop.permute.xlu2 %938 }
 0x1bd   :  { %v718_v4 = vpop.permute.xlu0 %717  ;;  %v713_v7 = vpop.permute.xlu1 %712 }
 0x1be   :  { %720 = vst.msk [vmem:[#allocation2 + $0x18] sm:$0xff] %vm715_vm9, %v718_v4 }
 0x1bf   :  { %716 = vst.msk [vmem:[#allocation2] sm:$0xff] %vm715_vm9, %v713_v7  ;;  %vm861_vm9 = vcmask 162880   ;;  %v966_v7 = vld [vmem:[%s1766_s23 + $0x10] sm:$0xff] }
 0x1c0   :  { %v606_v44 = vpop.f32.mrf.mxu2  ;;  %730 = vst.msk [vmem:[#allocation2 + $0x18] sm:$0xff] %vm725_vm10, %v728_v2 }
 0x1c1   :  { %852 = vrot.lane.b32.xlu1 %v603_v50, %s1303_s9  ;;  %863 = vrot.lane.b32.xlu0 %v606_v44, %s1304_s10  ;;  %v746_v6 = vpop.permute.xlu2 %745 }
 0x1c2   :  { %858 = vrot.lane.b32.xlu2 %v606_v44, %s1305_s0 }
 0x1c5   :  { %v723_v3 = vpop.permute.xlu0 %722 }
 0x1c6   :  { %726 = vst.msk [vmem:[#allocation2] sm:$0xff] %vm725_vm10, %v723_v3  ;;  %vm871_vm10 = vcmask 261280  }
 0x1c8   :  { %v609_v8 = vpop.f32.mrf.mxu2 }
 0x1c9   :  { %868 = vrot.lane.b32.xlu1 %v609_v8, %s1306_s11  ;;  %v761_v13 = vpop.permute.xlu2 %760 }
 0x1ca   :  { %873 = vrot.lane.b32.xlu2 %v609_v8, %s1305_s0 }
 0x1cd   :  { %v733_v9 = vpop.permute.xlu0 %732 }
 0x1ce   :  { %736 = vst.msk [vmem:[#allocation2] sm:$0xff] %vm735_vm11, %v733_v9 }
 0x1cf   :  { %738 = vst.msk [vmem:[#allocation2 + $0x8] sm:$0xff] %vm737_vm12, %v733_v9 }
 0x1d0   :  { %v612_v10 = vpop.f32.mrf.mxu2  ;;  %749 = vst.msk [vmem:[#allocation2 + $0x8] sm:$0xff] %vm748_vm13, %v746_v6  ;;  %v969_v6 = vld [vmem:[%s1766_s23 + $0x28] sm:$0xf] }
 0x1d1   :  { %883 = vrot.lane.b32.xlu1 %v612_v10, %s1306_s11 }
 0x1d2   :  { %878 = vrot.lane.b32.xlu2 %v612_v10, %s1307_s12 }
 0x1d5   :  { %v740_v11 = vpop.permute.xlu0 %739  ;;  %v751_v14 = vpop.permute.xlu1 %750  ;;  %v970_v16 = vld [vmem:[#allocation2] sm:$0xff] }
 0x1d6   :  { %742 = vst.msk [vmem:[#allocation2 + $0x18] sm:$0xff] %vm735_vm11, %v740_v11  ;;  %v973_v17 = vmax.f32 %v970_v16, 0.0  ;;  %v776_v23 = vpop.permute.xlu2 %775  ;;  %vm881_vm11 = vcmask 359680  }
 0x1d7   :  { %743 = vst.msk [vmem:[#allocation2 + $0x20] sm:$0xff] %vm737_vm12, %v740_v11  ;;  %vm891_vm12 = vcmask 458080  }
 0x1d8   :  { %753 = vst.msk [vmem:[#allocation2 + $0x20] sm:$0xff] %vm748_vm13, %v751_v14  ;;  %v615_v19 = vpop.f32.mrf.mxu2  ;;  %996 = vmatpush.xpose.msrb.mxu2 %v973_v17  ;;  %vm901_vm13 = vcmask 556480  }
 0x1d9   :  { %888 = vrot.lane.b32.xlu1 %v615_v19, %s1308_s13  ;;  %893 = vrot.lane.b32.xlu0 %v615_v19, %s1307_s12  ;;  %763 = vst.msk [vmem:[#allocation2 + $0x20] sm:$0xff] %vm758_vm14, %v761_v13 }
 0x1db   :  { %997 = vmatmul.f32.vlgmr.msrb.gmra.mxu2 %v964_v21 }
 0x1dd   :  { %v1731_v20 = vpop.permute.xlu1 %948  ;;  %v1063_v39 = vld [vmem:[#allocation2 + $0x18] sm:$0xff] }
 0x1de   :  { %v781_v28 = vpop.permute.xlu2 %780  ;;  %v1066_v24 = vmax.f32 %v1063_v39, 0.0 }
 0x1e0   :  { %v618_v22 = vpop.f32.mrf.mxu2 }
 0x1e1   :  { %898 = vrot.lane.b32.xlu0 %v618_v22, %s1309_s14 }
 0x1e5   :  { %v756_v15 = vpop.permute.xlu1 %755  ;;  %v766_v25 = vpop.permute.xlu0 %765 }
 0x1e6   :  { %759 = vst.msk [vmem:[#allocation2 + $0x8] sm:$0xff] %vm758_vm14, %v756_v15  ;;  %vm911_vm14 = vcmask 654880  }
 0x1e7   :  { %769 = vst.msk [vmem:[#allocation2 + $0x8] sm:$0xff] %vm768_vm15, %v766_v25  ;;  %v1264_v25 = vld [vmem:[%s976_s19] ss:$0 sm:$0xff] }
 0x1e8   :  { %v621_v26 = vpop.f32.mrf.mxu2  ;;  %779 = vst.msk [vmem:[#allocation2 + $0x8] sm:$0xff] %vm778_vm0, %v776_v23 }
 0x1e9   :  { %908 = vrot.lane.b32.xlu2 %v621_v26, %s1310_s2 }
 0x1ed   :  { %v771_v36 = vpop.permute.xlu0 %770  ;;  %v806_v30 = vpop.permute.xlu2 %805 }
 0x1ee   :  { %773 = vst.msk [vmem:[#allocation2 + $0x20] sm:$0xff] %vm768_vm15, %v771_v36  ;;  %vm921_vm15 = vcmask 753280  }
 0x1ef   :  { %783 = vst.msk [vmem:[#allocation2 + $0x20] sm:$0xff] %vm778_vm0, %v781_v28  ;;  %vm931_vm0 = vcmask 851680  }
 0x1f0   :  { %v624_v42 = vpop.f32.mrf.mxu2 }
 0x1f1   :  { %918 = vrot.lane.b32.xlu1 %v624_v42, %s1311_s15  ;;  %903 = vrot.lane.b32.xlu2 %v618_v22, %s1308_s13 }
 0x1f5   :  { %v786_v31 = vpop.permute.xlu1 %785  ;;  %v811_v62 = vpop.permute.xlu2 %810 }
 0x1f6   :  { %789 = vst.msk [vmem:[#allocation2 + $0x8] sm:$0xff] %vm788_vm1, %v786_v31 }
 0x1f8   :  { %v627_v32 = vpop.f32.mrf.mxu2 }
 0x1f9   :  { %820 = vrot.lane.b32.xlu1 %v1713_v56, %s1300_s29  ;;  %928 = vrot.lane.b32.xlu0 %v627_v32, %s1312_s1  ;;  %v967_v56 = vld [vmem:[%s1766_s23 + $0x18] sm:$0xf] }
 0x1fa   :  { %840 = vrot.lane.b32.xlu2 %v1721_v0, %s1302_s8  ;;  %1000 = vmatmul.f32.gmra.mxu2 %v967_v56 }
 0x1fd   :  { %v791_v33 = vpop.permute.xlu1 %790  ;;  %v796_v52 = vpop.permute.xlu0 %795 }
 0x1fe   :  { %793 = vst.msk [vmem:[#allocation2 + $0x20] sm:$0xff] %vm788_vm1, %v791_v33  ;;  %vm941_vm1 = vcmask 950080  }
 0x1ff   :  { %799 = vst.msk [vmem:[#allocation2 + $0x8] sm:$0xff] %vm798_vm2, %v796_v52 }
 0x200   :  { %809 = vst.msk [vmem:[#allocation2 + $0x8] sm:$0xff] %vm808_vm3, %v806_v30 }
 0x201   :  { %913 = vrot.lane.b32.xlu1 %v621_v26, %s1309_s14  ;;  %830 = vrot.lane.b32.xlu0 %v1717_v59, %s1301_s30 }
 0x202   :  { %943 = vrot.lane.b32.xlu2 %v1697_v27, %s1312_s1 }
 0x203   :  { %v826_v37 = vpop.permute.xlu2 %825 }
 0x205   :  { %v801_v34 = vpop.permute.xlu0 %800 }
 0x206   :  { %803 = vst.msk [vmem:[#allocation2 + $0x20] sm:$0xff] %vm798_vm2, %v801_v34  ;;  %vm951_vm2 = vcmask 1048480  }
 0x207   :  { %813 = vst.msk [vmem:[#allocation2 + $0x20] sm:$0xff] %vm808_vm3, %v811_v62  ;;  %vm1051_vm3 = vcmask 60416  }
 0x209   :  { %933 = vrot.lane.b32.xlu1 %v627_v32, %s1311_s15  ;;  %923 = vrot.lane.b32.xlu0 %v624_v42, %s1310_s2 }
 0x211   :  { %953 = vrot.lane.b32.xlu0 %v1702_v5, %s1293_s24  ;;  %s1770_s24 = sld [smem:[#allocation3 + $0x1]] }
 0x213   :  { %v816_v55 = vpop.permute.xlu1 %815 }
 0x214   :  { %819 = vst.msk [vmem:[#allocation2 + $0x8] sm:$0xff] %vm818_vm4, %v816_v55 }
 0x215   :  { %829 = vst.msk [vmem:[#allocation2 + $0x8] sm:$0xff] %vm828_vm5, %v826_v37 }
 0x217   :  { %s1192_s25 = smul.u32 48, %s1770_s24  ;;  %s1069_s3 = scalar_lea.vmem %s1850_s6, %s1770_s24 }
 0x218   :  { %v1265_v55 = vld [vmem:[%s1069_s3] ss:$0 sm:$0xff] }
 0x219   :  { %s1779_s28 = scalar_lea.vmem %s1849_s5, %s1192_s25 }
 0x21a   :  { %v1057_v57 = vld [vmem:[%s1779_s28] sm:$0xff]  ;;  %v1060_v59 = vld [vmem:[%s1779_s28 + $0x18] sm:$0xf]  ;;  %v1058_v11 = vld [vmem:[%s1779_s28 + $0x8] sm:$0xff] }
 0x21b   :  { %v1059_v17 = vld [vmem:[%s1779_s28 + $0x10] sm:$0xff]  ;;  %v1061_v13 = vld [vmem:[%s1779_s28 + $0x20] sm:$0xf]  ;;  %v1062_v19 = vld [vmem:[%s1779_s28 + $0x28] sm:$0xf] }
 0x21c   :  { %v859_v5 = vpop.permute.xlu2 %858 }
 0x223   :  { %v836_v27 = vpop.permute.xlu0 %835 }
 0x224   :  { %839 = vst.msk [vmem:[#allocation2 + $0x8] sm:$0xff] %vm838_vm6, %v836_v27  ;;  %v874_v38 = vpop.permute.xlu2 %873 }
 0x22b   :  { %v846_v12 = vpop.permute.xlu1 %845 }
 0x22c   :  { %849 = vst.msk [vmem:[#allocation2 + $0x8] sm:$0xff] %vm848_vm7, %v846_v12  ;;  %v879_v45 = vpop.permute.xlu2 %878 }
 0x22d   :  { %851 = vst.msk [vmem:[#allocation2 + $0x10] sm:$0xff] %vm850_vm8, %v846_v12 }
 0x22e   :  { %862 = vst.msk [vmem:[#allocation2 + $0x10] sm:$0xff] %vm861_vm9, %v859_v5 }
 0x233   :  { %v1758_v40 = vpop.permute.xlu1 %852  ;;  %v864_v18 = vpop.permute.xlu0 %863  ;;  %v971_v41 = vld [vmem:[#allocation2 + $0x8] sm:$0xff] }
 0x234   :  { %856 = vst.msk [vmem:[#allocation2 + $0x28] sm:$0xff] %vm850_vm8, %v1758_v40  ;;  %v974_v35 = vmax.f32 %v971_v41, 0.0 }
 0x235   :  { %866 = vst.msk [vmem:[#allocation2 + $0x28] sm:$0xff] %vm861_vm9, %v864_v18 }
 0x236   :  { %1019 = vmatpush.xpose.msra.mxu3 %v974_v35  ;;  %876 = vst.msk [vmem:[#allocation2 + $0x28] sm:$0xff] %vm871_vm10, %v874_v38 }
 0x239   :  { %1020 = vmatmul.f32.vlgmr.msra.gmra.mxu3 %v965_v53 }
 0x23a   :  { %1089 = vmatpush.xpose.msrb.mxu3 %v1066_v24 }
 0x23b   :  { %v869_v46 = vpop.permute.xlu1 %868 }
 0x23c   :  { %872 = vst.msk [vmem:[#allocation2 + $0x10] sm:$0xff] %vm871_vm10, %v869_v46 }
 0x23d   :  { %882 = vst.msk [vmem:[#allocation2 + $0x10] sm:$0xff] %vm881_vm11, %v879_v45 }
 0x241   :  { %1023 = vmatmul.f32.gmra.mxu3 %v968_v43 }
 0x243   :  { %v884_v29 = vpop.permute.xlu1 %883  ;;  %v909_v47 = vpop.permute.xlu2 %908 }
 0x244   :  { %886 = vst.msk [vmem:[#allocation2 + $0x28] sm:$0xff] %vm881_vm11, %v884_v29 }
 0x249   :  { %1090 = vmatmul.f32.vlgmr.msrb.gmra.mxu3 %v1057_v57 }
 0x24b   :  { %v889_v48 = vpop.permute.xlu1 %888  ;;  %v894_v49 = vpop.permute.xlu0 %893 }
 0x24c   :  { %892 = vst.msk [vmem:[#allocation2 + $0x10] sm:$0xff] %vm891_vm12, %v889_v48  ;;  %v904_v51 = vpop.permute.xlu2 %903 }
 0x24d   :  { %896 = vst.msk [vmem:[#allocation2 + $0x28] sm:$0xff] %vm891_vm12, %v894_v49 }
 0x24e   :  { %906 = vst.msk [vmem:[#allocation2 + $0x28] sm:$0xff] %vm901_vm13, %v904_v51 }
 0x251   :  { %1093 = vmatmul.f32.gmra.mxu3 %v1060_v59 }
 0x253   :  { %v899_v54 = vpop.permute.xlu0 %898 }
 0x254   :  { %902 = vst.msk [vmem:[#allocation2 + $0x10] sm:$0xff] %vm901_vm13, %v899_v54  ;;  %v841_v0 = vpop.permute.xlu2 %840 }
 0x255   :  { %912 = vst.msk [vmem:[#allocation2 + $0x10] sm:$0xff] %vm911_vm14, %v909_v47 }
 0x25c   :  { %v944_v3 = vpop.permute.xlu2 %943 }
 0x25e   :  { %v998_v22 = vpop.f32.mrf.mxu2 }
 0x25f   :  { %v999_v36 = vadd.f32 %v1264_v25, %v998_v22 }
 0x263   :  { %v919_v58 = vpop.permute.xlu1 %918 }
 0x264   :  { %922 = vst.msk [vmem:[#allocation2 + $0x10] sm:$0xff] %vm921_vm15, %v919_v58 }
 0x26b   :  { %v821_v60 = vpop.permute.xlu1 %820  ;;  %v929_v63 = vpop.permute.xlu0 %928 }
 0x26c   :  { %823 = vst.msk [vmem:[#allocation2 + $0x20] sm:$0xff] %vm818_vm4, %v821_v60 }
 0x26d   :  { %932 = vst.msk [vmem:[#allocation2 + $0x10] sm:$0xff] %vm931_vm0, %v929_v63 }
 0x26e   :  { %942 = vst.msk [vmem:[#allocation2 + $0x10] sm:$0xff] %vm941_vm1, %v1724_v61 }
 0x26f   :  { %952 = vst.msk [vmem:[#allocation2 + $0x10] sm:$0xff] %vm951_vm2, %v1731_v20  ;;  %v1313_v20 = vmov 0.0  }
 0x270   :  { %957 = vst [vmem:[%s1851_s7] sm:$0xff] %v1313_v20 }
 0x271   :  { %958 = vst [vmem:[%s1851_s7 + $0x8] sm:$0xff] %v1313_v20 }
 0x272   :  { %959 = vst [vmem:[%s1851_s7 + $0x10] sm:$0xff] %v1313_v20 }
 0x273   :  { %v914_v1 = vpop.permute.xlu1 %913  ;;  %v831_v50 = vpop.permute.xlu0 %830 }
 0x274   :  { %916 = vst.msk [vmem:[#allocation2 + $0x28] sm:$0xff] %vm911_vm14, %v914_v1 }
 0x275   :  { %833 = vst.msk [vmem:[#allocation2 + $0x20] sm:$0xff] %vm828_vm5, %v831_v50 }
 0x276   :  { %843 = vst.msk [vmem:[#allocation2 + $0x20] sm:$0xff] %vm838_vm6, %v841_v0  ;;  %v972_v2 = vld [vmem:[#allocation2 + $0x10] sm:$0xff] }
 0x277   :  { %855 = vst.msk [vmem:[#allocation2 + $0x20] sm:$0xff] %vm848_vm7, %v1758_v40  ;;  %v975_v4 = vmax.f32 %v972_v2, 0.0 }
 0x279   :  { %1042 = vmatpush.xpose.msra.mxu2 %v975_v4 }
 0x27b   :  { %v934_v44 = vpop.permute.xlu1 %933  ;;  %v924_v61 = vpop.permute.xlu0 %923 }
 0x27c   :  { %926 = vst.msk [vmem:[#allocation2 + $0x28] sm:$0xff] %vm921_vm15, %v924_v61  ;;  %1043 = vmatmul.f32.vlgmr.msra.gmra.mxu2 %v966_v7 }
 0x27d   :  { %936 = vst.msk [vmem:[#allocation2 + $0x28] sm:$0xff] %vm931_vm0, %v934_v44  ;;  %v1001_v15 = vpop.f32.mrf.mxu2 }
 0x27e   :  { %946 = vst.msk [vmem:[#allocation2 + $0x28] sm:$0xff] %vm941_vm1, %v944_v3  ;;  %v1064_v8 = vld [vmem:[#allocation2 + $0x20] sm:$0xff]  ;;  %v1002_v30 = vadd.f32 %v1264_v25, %v1001_v15 }
 0x27f   :  { %v1067_v9 = vmax.f32 %v1064_v8, 0.0 }
 0x281   :  { %1112 = vmatpush.xpose.msrb.mxu2 %v1067_v9 }
 0x283   :  { %v954_v10 = vpop.permute.xlu0 %953 }
 0x284   :  { %956 = vst.msk [vmem:[#allocation2 + $0x28] sm:$0xff] %vm951_vm2, %v954_v10  ;;  %1046 = vmatmul.f32.gmra.mxu2 %v969_v6 }
 0x28b   :  { %v1065_v14 = vld [vmem:[#allocation2 + $0x28] sm:$0xff] }
 0x28c   :  { %v1068_v16 = vmax.f32 %v1065_v14, 0.0  ;;  %1113 = vmatmul.f32.vlgmr.msrb.gmra.mxu2 %v1058_v11 }
 0x28e   :  { %1135 = vmatpush.xpose.msra.mxu3 %v1068_v16 }
 0x291   :  { %1136 = vmatmul.f32.vlgmr.msra.gmra.mxu3 %v1059_v17 }
 0x294   :  { %1116 = vmatmul.f32.gmra.mxu2 %v1061_v13 }
 0x299   :  { %1139 = vmatmul.f32.gmra.mxu3 %v1062_v19 }
 0x2bc   :  { %v1021_v23 = vpop.f32.mrf.mxu3 }
 0x2bd   :  { %v1022_v28 = vadd.f32 %v1021_v23, %v999_v36 }
 0x2c4   :  { %v1024_v26 = vpop.f32.mrf.mxu3 }
 0x2c5   :  { %v1025_v33 = vadd.f32 %v1024_v26, %v1002_v30 }
 0x2cc   :  { %v1091_v32 = vpop.f32.mrf.mxu3 }
 0x2cd   :  { %v1092_v27 = vadd.f32 %v1265_v55, %v1091_v32 }
 0x2d4   :  { %v1094_v62 = vpop.f32.mrf.mxu3 }
 0x2d5   :  { %v1095_v40 = vadd.f32 %v1265_v55, %v1094_v62 }
 0x2ff   :  { %v1044_v42 = vpop.f32.mrf.mxu2 }
 0x300   :  { %v1045_v31 = vadd.f32 %v1044_v42, %v1022_v28 }
 0x302   :  { %1050 = vst.msk [vmem:[%s1851_s7] sm:$0xff] %vm850_vm8, %v1045_v31 }
 0x307   :  { %v1047_v52 = vpop.f32.mrf.mxu2 }
 0x308   :  { %v1048_v34 = vadd.f32 %v1047_v52, %v1025_v33 }
 0x30a   :  { %1052 = vst.msk [vmem:[%s1851_s7 + $0x8] sm:$0xf] %vm1051_vm3, %v1048_v34 }
 0x30f   :  { %v1114_v37 = vpop.f32.mrf.mxu2 }
 0x310   :  { %v1115_v5 = vadd.f32 %v1114_v37, %v1092_v27 }
 0x314   :  { %v1137_v12 = vpop.f32.mrf.mxu3 }
 0x315   :  { %v1138_v38 = vadd.f32 %v1137_v12, %v1115_v5 }
 0x317   :  { %1143 = vst.msk [vmem:[%s1851_s7 + $0xc] sm:$0xff] %vm850_vm8, %v1138_v38  ;;  %v1117_v39 = vpop.f32.mrf.mxu2 }
 0x318   :  { %v1118_v18 = vadd.f32 %v1117_v39, %v1095_v40 }
 0x31c   :  { %v1140_v41 = vpop.f32.mrf.mxu3 }
 0x31d   :  { %v1141_v35 = vadd.f32 %v1140_v41, %v1118_v18 }
 0x31f   :  { %1144 = vst.msk [vmem:[%s1851_s7 + $0x14] sm:$0xf] %vm1051_vm3, %v1141_v35 }
 0x320   :  { %1149 = vsyncpa [#allocation4], 1 }

</bundles_post_ra>
